<compile_context>
chip_gen: v7x
topology: tpu7x:2x2x1
jax: 0.10.0
libtpu: 0.0.40
codegen_flags: <defaults>
</compile_context>

<pallas_src>
import functools
import math

import jax
import jax.numpy as jnp
from jax.experimental import pallas as pl
from jax.experimental.pallas import tpu as pltpu

# ----------------------------- model config (small) -------------------------
PATCH = 16
IMG = 32            # 32x32 image -> 2x2 = 4 patches
IN_CH = 3
EMBED_DIM = 64      # "num_features" of the synthetic backbone
DEPTH = 2
NUM_HEADS = 2
MLP_RATIO = 4
NUM_CLASSES = 100
LN_EPS = 1e-6       # DINO / timm ViT uses eps=1e-6

HEAD_DIM = EMBED_DIM // NUM_HEADS
HIDDEN = MLP_RATIO * EMBED_DIM
NUM_PATCHES = (IMG // PATCH) ** 2
T_REAL = NUM_PATCHES + 1        # 5 tokens (CLS + patches)
T_PAD = 8                       # pad to a full sublane of rows
NC_PAD = 128                    # pad classes 100 -> 128 for a lane-dense store
CPP = IN_CH * PATCH * PATCH     # 768
ATTN_SCALE = 1.0 / math.sqrt(HEAD_DIM)
NEG_INF = -1e30


# ------------------------------ fused Pallas kernel ---------------------------
def _layernorm(x, g, b):
    # one-pass variance: E[x^2] - mean^2  (halves the cross-lane reductions)
    mean = jnp.mean(x, axis=-1, keepdims=True)
    var = jnp.mean(x * x, axis=-1, keepdims=True) - mean * mean
    return (x - mean) * jax.lax.rsqrt(var + LN_EPS) * g + b


def _dino_fused_kernel(
    xp_ref, patch_w_ref, patch_b_ref, cls_ref, pos_ref,
    ln1_g_ref, ln1_b_ref, qkv_w_ref, qkv_b_ref, proj_w_ref, proj_b_ref,
    ln2_g_ref, ln2_b_ref, fc1_w_ref, fc1_b_ref, fc2_w_ref, fc2_b_ref,
    lnf_g_ref, lnf_b_ref, clf_w_ref, clf_b_ref,
    out_ref,
):
    D = EMBED_DIM

    # ---- patch embedding + token assembly (row 0 = CLS, 1..Np = patches) ----
    xp = xp_ref[0]                                                    # (T_PAD, CPP)
    pe = jnp.dot(xp, patch_w_ref[...],
                 preferred_element_type=jnp.float32) + patch_b_ref[...]
    row = jax.lax.broadcasted_iota(jnp.int32, (T_PAD, 1), 0)
    tokens = jnp.where(row == 0, cls_ref[...],
                       jnp.where(row < T_REAL, pe, 0.0)) + pos_ref[...]

    # additive key mask: padded key columns never contribute to softmax
    col = jax.lax.broadcasted_iota(jnp.int32, (1, T_PAD), 1)
    kmask = jnp.where(col < T_REAL, 0.0, NEG_INF).astype(jnp.float32)

    for d in range(DEPTH):
        # ---------------- MHSA (pre-LN) ----------------
        h = _layernorm(tokens, ln1_g_ref[d], ln1_b_ref[d])
        qkv = jnp.dot(h, qkv_w_ref[d],
                      preferred_element_type=jnp.float32) + qkv_b_ref[d]  # (T_PAD, 3D)
        proj_w = proj_w_ref[d]                                            # (D, D)

        attn = jnp.zeros((T_PAD, D), jnp.float32)
        for hh in range(NUM_HEADS):
            lo = hh * HEAD_DIM
            q = qkv[:, lo:lo + HEAD_DIM]
            k = qkv[:, D + lo:D + lo + HEAD_DIM]
            v = qkv[:, 2 * D + lo:2 * D + lo + HEAD_DIM]
            # contract last dims directly (no explicit transpose feeding the MXU)
            s = jax.lax.dot_general(q, k, (((1,), (1,)), ((), ())),
                                    preferred_element_type=jnp.float32)
            s = s * ATTN_SCALE + kmask
            m = jnp.max(s, axis=-1, keepdims=True)
            p = jnp.exp(s - m)
            p = p * pl.reciprocal(jnp.sum(p, axis=-1, keepdims=True), approx=True)
            o_h = jnp.dot(p, v, preferred_element_type=jnp.float32)      # (T_PAD, Dh)
            # merge heads directly into the output projection (no lane concat)
            attn = attn + jnp.dot(o_h, proj_w[lo:lo + HEAD_DIM, :],
                                  preferred_element_type=jnp.float32)
        tokens = tokens + attn + proj_b_ref[d]

        # ---------------- MLP (pre-LN) ----------------
        h = _layernorm(tokens, ln2_g_ref[d], ln2_b_ref[d])
        h = jnp.dot(h, fc1_w_ref[d],
                    preferred_element_type=jnp.float32) + fc1_b_ref[d]
        # TODO(synk): PyTorch nn.GELU() default is exact erf-GELU; tanh
        # approximation is used here for robust Mosaic lowering.
        h = jax.nn.gelu(h, approximate=True)
        h = jnp.dot(h, fc2_w_ref[d],
                    preferred_element_type=jnp.float32) + fc2_b_ref[d]
        tokens = tokens + h

    # ---------------- final LN + classifier on the CLS token ----------------
    feats = _layernorm(tokens, lnf_g_ref[...], lnf_b_ref[...])
    cls_feat = feats[0:1, :]                                              # (1, D)
    logits = jnp.dot(cls_feat, clf_w_ref[...],
                     preferred_element_type=jnp.float32) + clf_b_ref[...]  # (1, 128)
    out_ref[0] = logits.astype(out_ref.dtype)


# ------------------------------ forward pass ---------------------------------
def dino_classifier_forward(x, params):
    B, C, H, W = x.shape
    P, D = PATCH, EMBED_DIM
    nh, nw = H // P, W // P
    Np = nh * nw
    cpp = C * P * P

    # Patchify NCHW -> (B, Np, C*P*P); flatten order (C, ph, pw) matches the
    # Conv2d(C, D, P, stride=P) weight flattened as (C*P*P, D).
    xp = x.reshape(B, C, nh, P, nw, P).transpose(0, 2, 4, 1, 3, 5).reshape(B, Np, cpp)
    # Place patches at token rows 1..Np (row 0 = CLS slot, rows Np+1.. = pad).
    xp_pad = jnp.zeros((B, T_PAD, cpp), jnp.float32).at[:, 1:1 + Np].set(xp)

    pos_pad = jnp.zeros((T_PAD, D), jnp.float32).at[:T_REAL].set(params["pos_embed"][0])
    cls_tok = params["cls_token"].reshape(1, D)
    patch_b = params["patch_b"].reshape(1, D)
    lnf_g = params["ln_g"].reshape(1, D)
    lnf_b = params["ln_b"].reshape(1, D)
    clf_w = jnp.zeros((D, NC_PAD), jnp.float32).at[:, :NUM_CLASSES].set(params["cls_w"])
    clf_b = jnp.zeros((1, NC_PAD), jnp.float32).at[0, :NUM_CLASSES].set(params["cls_b"])

    # Stack per-block weights along a leading DEPTH axis (static in-kernel loop).
    def stack_vec(name, n):
        return jnp.stack([blk[name] for blk in params["blocks"]]).reshape(DEPTH, 1, n)

    def stack_mat(name):
        return jnp.stack([blk[name] for blk in params["blocks"]])

    ln1_g = stack_vec("ln1_g", D); ln1_b = stack_vec("ln1_b", D)
    qkv_w = stack_mat("qkv_w");    qkv_b = stack_vec("qkv_b", 3 * D)
    proj_w = stack_mat("proj_w");  proj_b = stack_vec("proj_b", D)
    ln2_g = stack_vec("ln2_g", D); ln2_b = stack_vec("ln2_b", D)
    fc1_w = stack_mat("fc1_w");    fc1_b = stack_vec("fc1_b", HIDDEN)
    fc2_w = stack_mat("fc2_w");    fc2_b = stack_vec("fc2_b", D)

    full2 = lambda shape: pl.BlockSpec(shape, lambda b: (0, 0))
    full3 = lambda shape: pl.BlockSpec(shape, lambda b: (0, 0, 0))

    logits_pad = pl.pallas_call(
        _dino_fused_kernel,
        out_shape=jax.ShapeDtypeStruct((B, 1, NC_PAD), jnp.float32),
        grid=(B,),
        in_specs=[
            pl.BlockSpec((1, T_PAD, cpp), lambda b: (b, 0, 0)),     # patches (per-batch)
            full2((cpp, D)), full2((1, D)),                         # patch_w, patch_b
            full2((1, D)), full2((T_PAD, D)),                       # cls token, pos embed
            full3((DEPTH, 1, D)), full3((DEPTH, 1, D)),             # ln1 g/b
            full3((DEPTH, D, 3 * D)), full3((DEPTH, 1, 3 * D)),     # qkv w/b
            full3((DEPTH, D, D)), full3((DEPTH, 1, D)),             # proj w/b
            full3((DEPTH, 1, D)), full3((DEPTH, 1, D)),             # ln2 g/b
            full3((DEPTH, D, HIDDEN)), full3((DEPTH, 1, HIDDEN)),   # fc1 w/b
            full3((DEPTH, HIDDEN, D)), full3((DEPTH, 1, D)),        # fc2 w/b
            full2((1, D)), full2((1, D)),                           # final LN g/b
            full2((D, NC_PAD)), full2((1, NC_PAD)),                 # classifier w/b (padded)
        ],
        out_specs=pl.BlockSpec((1, 1, NC_PAD), lambda b: (b, 0, 0)),
        compiler_params=pltpu.CompilerParams(
            dimension_semantics=("parallel",)),   # v7x: batch split across both TCs
    )(xp_pad, params["patch_w"], patch_b, cls_tok, pos_pad,
      ln1_g, ln1_b, qkv_w, qkv_b, proj_w, proj_b,
      ln2_g, ln2_b, fc1_w, fc1_b, fc2_w, fc2_b,
      lnf_g, lnf_b, clf_w, clf_b)

    return logits_pad.reshape(B, NC_PAD)[:, :NUM_CLASSES]


# ------------------------------ param init -----------------------------------
def init_params(key):
    D = EMBED_DIM
    Hd = HIDDEN
    T = T_REAL

    def nrm(k, shape, std=0.02):
        return std * jax.random.normal(k, shape, dtype=jnp.float32)

    keys = iter(jax.random.split(key, 8 + DEPTH * 8))
    params = {
        "patch_w": nrm(next(keys), (CPP, D)),
        "patch_b": jnp.zeros((D,), jnp.float32),
        "cls_token": nrm(next(keys), (1, 1, D)),
        "pos_embed": nrm(next(keys), (1, T, D)),
        "ln_g": jnp.ones((D,), jnp.float32),
        "ln_b": jnp.zeros((D,), jnp.float32),
        "cls_w": nrm(next(keys), (D, NUM_CLASSES)),
        "cls_b": jnp.zeros((NUM_CLASSES,), jnp.float32),
        "blocks": [],
    }
    for _ in range(DEPTH):
        params["blocks"].append({
            "ln1_g": jnp.ones((D,), jnp.float32),
            "ln1_b": jnp.zeros((D,), jnp.float32),
            "qkv_w": nrm(next(keys), (D, 3 * D)),
            "qkv_b": jnp.zeros((3 * D,), jnp.float32),
            "proj_w": nrm(next(keys), (D, D)),
            "proj_b": jnp.zeros((D,), jnp.float32),
            "ln2_g": jnp.ones((D,), jnp.float32),
            "ln2_b": jnp.zeros((D,), jnp.float32),
            "fc1_w": nrm(next(keys), (D, Hd)),
            "fc1_b": jnp.zeros((Hd,), jnp.float32),
            "fc2_w": nrm(next(keys), (Hd, D)),
            "fc2_b": jnp.zeros((D,), jnp.float32),
        })
    return params


# ---------------------------------- main --------------------------------------
if __name__ == "__main__":
    x = jax.random.normal(jax.random.PRNGKey(0), (2, IN_CH, IMG, IMG), dtype=jnp.float32)
    params = init_params(jax.random.PRNGKey(1))

    fwd = jax.jit(dino_classifier_forward)
    logits = fwd(x, params)
    jax.block_until_ready(logits)

    assert logits.shape == (2, NUM_CLASSES), logits.shape
    assert jnp.all(jnp.isfinite(logits))
    print("KERNEL_OK")
</pallas_src>

<mosaic_0001>
module attributes {stable_mosaic.version = 11 : i64} {
  func.func @_dino_fused_kernel(%arg0: i32, %arg1: memref<1x8x768xf32, #tpu.memory_space<vmem>>, %arg2: memref<768x64xf32, #tpu.memory_space<vmem>>, %arg3: memref<1x64xf32, #tpu.memory_space<vmem>>, %arg4: memref<1x64xf32, #tpu.memory_space<vmem>>, %arg5: memref<8x64xf32, #tpu.memory_space<vmem>>, %arg6: memref<2x1x64xf32, #tpu.memory_space<vmem>>, %arg7: memref<2x1x64xf32, #tpu.memory_space<vmem>>, %arg8: memref<2x64x192xf32, #tpu.memory_space<vmem>>, %arg9: memref<2x1x192xf32, #tpu.memory_space<vmem>>, %arg10: memref<2x64x64xf32, #tpu.memory_space<vmem>>, %arg11: memref<2x1x64xf32, #tpu.memory_space<vmem>>, %arg12: memref<2x1x64xf32, #tpu.memory_space<vmem>>, %arg13: memref<2x1x64xf32, #tpu.memory_space<vmem>>, %arg14: memref<2x64x256xf32, #tpu.memory_space<vmem>>, %arg15: memref<2x1x256xf32, #tpu.memory_space<vmem>>, %arg16: memref<2x256x64xf32, #tpu.memory_space<vmem>>, %arg17: memref<2x1x64xf32, #tpu.memory_space<vmem>>, %arg18: memref<1x64xf32, #tpu.memory_space<vmem>>, %arg19: memref<1x64xf32, #tpu.memory_space<vmem>>, %arg20: memref<64x128xf32, #tpu.memory_space<vmem>>, %arg21: memref<1x128xf32, #tpu.memory_space<vmem>>, %arg22: memref<1x1x128xf32, #tpu.memory_space<vmem>>) attributes {dimension_semantics = [#tpu.dimension_semantics<parallel>], iteration_bounds = array<i64: 2>, scalar_prefetch = 0 : i64, scratch_operands = 0 : i64, tpu.core_type = #tpu.core_type<tc>, window_params = [{transform_indices = @transform_0, window_bounds = array<i64: 1, 8, 768>}, {pipeline_mode = #tpu.pipeline_mode<synchronous>, transform_indices = @transform_1, window_bounds = array<i64: 768, 64>}, {pipeline_mode = #tpu.pipeline_mode<synchronous>, transform_indices = @transform_2, window_bounds = array<i64: 1, 64>}, {pipeline_mode = #tpu.pipeline_mode<synchronous>, transform_indices = @transform_3, window_bounds = array<i64: 1, 64>}, {pipeline_mode = #tpu.pipeline_mode<synchronous>, transform_indices = @transform_4, window_bounds = array<i64: 8, 64>}, {pipeline_mode = #tpu.pipeline_mode<synchronous>, transform_indices = @transform_5, window_bounds = array<i64: 2, 1, 64>}, {pipeline_mode = #tpu.pipeline_mode<synchronous>, transform_indices = @transform_6, window_bounds = array<i64: 2, 1, 64>}, {pipeline_mode = #tpu.pipeline_mode<synchronous>, transform_indices = @transform_7, window_bounds = array<i64: 2, 64, 192>}, {pipeline_mode = #tpu.pipeline_mode<synchronous>, transform_indices = @transform_8, window_bounds = array<i64: 2, 1, 192>}, {pipeline_mode = #tpu.pipeline_mode<synchronous>, transform_indices = @transform_9, window_bounds = array<i64: 2, 64, 64>}, {pipeline_mode = #tpu.pipeline_mode<synchronous>, transform_indices = @transform_10, window_bounds = array<i64: 2, 1, 64>}, {pipeline_mode = #tpu.pipeline_mode<synchronous>, transform_indices = @transform_11, window_bounds = array<i64: 2, 1, 64>}, {pipeline_mode = #tpu.pipeline_mode<synchronous>, transform_indices = @transform_12, window_bounds = array<i64: 2, 1, 64>}, {pipeline_mode = #tpu.pipeline_mode<synchronous>, transform_indices = @transform_13, window_bounds = array<i64: 2, 64, 256>}, {pipeline_mode = #tpu.pipeline_mode<synchronous>, transform_indices = @transform_14, window_bounds = array<i64: 2, 1, 256>}, {pipeline_mode = #tpu.pipeline_mode<synchronous>, transform_indices = @transform_15, window_bounds = array<i64: 2, 256, 64>}, {pipeline_mode = #tpu.pipeline_mode<synchronous>, transform_indices = @transform_16, window_bounds = array<i64: 2, 1, 64>}, {pipeline_mode = #tpu.pipeline_mode<synchronous>, transform_indices = @transform_17, window_bounds = array<i64: 1, 64>}, {pipeline_mode = #tpu.pipeline_mode<synchronous>, transform_indices = @transform_18, window_bounds = array<i64: 1, 64>}, {pipeline_mode = #tpu.pipeline_mode<synchronous>, transform_indices = @transform_19, window_bounds = array<i64: 64, 128>}, {pipeline_mode = #tpu.pipeline_mode<synchronous>, transform_indices = @transform_20, window_bounds = array<i64: 1, 128>}, {transform_indices = @transform_21, window_bounds = array<i64: 1, 1, 128>}]} {
    %c0 = arith.constant 0 : index
    %c0_0 = arith.constant 0 : index
    %c0_1 = arith.constant 0 : index
    %0 = vector.load %arg1[%c0, %c0_0, %c0_1] : memref<1x8x768xf32, #tpu.memory_space<vmem>>, vector<1x8x768xf32>
    %1 = vector.shape_cast %0 : vector<1x8x768xf32> to vector<8x768xf32>
    %c0_2 = arith.constant 0 : index
    %c0_3 = arith.constant 0 : index
    %2 = vector.load %arg2[%c0_2, %c0_3] : memref<768x64xf32, #tpu.memory_space<vmem>>, vector<768x64xf32>
    %cst = arith.constant dense<0.000000e+00> : vector<8x64xf32>
    %3 = tpu.matmul %1, %2, %cst {dimension_numbers = #tpu.dot_dimension_numbers<[1], [0], [0], [1], [0, 0, 1, 1], [], []>} : vector<8x768xf32>, vector<768x64xf32>, vector<8x64xf32> -> vector<8x64xf32>
    %c0_4 = arith.constant 0 : index
    %c0_5 = arith.constant 0 : index
    %4 = vector.load %arg3[%c0_4, %c0_5] : memref<1x64xf32, #tpu.memory_space<vmem>>, vector<1x64xf32>
    %5 = vector.broadcast %4 : vector<1x64xf32> to vector<8x64xf32>
    %6 = arith.addf %3, %5 : vector<8x64xf32>
    %7 = tpu.iota {dimensions = array<i32: 0>} : vector<8x1xi32>
    %c0_i32 = arith.constant 0 : i32
    %8 = vector.broadcast %c0_i32 : i32 to vector<8x1xi32>
    %9 = arith.cmpi eq, %7, %8 : vector<8x1xi32>
    %c0_6 = arith.constant 0 : index
    %c0_7 = arith.constant 0 : index
    %10 = vector.load %arg4[%c0_6, %c0_7] : memref<1x64xf32, #tpu.memory_space<vmem>>, vector<1x64xf32>
    %c5_i32 = arith.constant 5 : i32
    %11 = vector.broadcast %c5_i32 : i32 to vector<8x1xi32>
    %12 = arith.cmpi slt, %7, %11 : vector<8x1xi32>
    %cst_8 = arith.constant 0.000000e+00 : f32
    %13 = vector.shape_cast %12 : vector<8x1xi1> to vector<8x1xi1>
    %14 = vector.broadcast %13 : vector<8x1xi1> to vector<8x64xi1>
    %15 = vector.broadcast %cst_8 : f32 to vector<8x64xf32>
    %16 = arith.select %14, %6, %15 : vector<8x64xi1>, vector<8x64xf32>
    %17 = vector.shape_cast %9 : vector<8x1xi1> to vector<8x1xi1>
    %18 = vector.broadcast %17 : vector<8x1xi1> to vector<8x64xi1>
    %19 = vector.shape_cast %10 : vector<1x64xf32> to vector<1x64xf32>
    %20 = vector.broadcast %19 : vector<1x64xf32> to vector<8x64xf32>
    %21 = arith.select %18, %20, %16 : vector<8x64xi1>, vector<8x64xf32>
    %c0_9 = arith.constant 0 : index
    %c0_10 = arith.constant 0 : index
    %22 = vector.load %arg5[%c0_9, %c0_10] : memref<8x64xf32, #tpu.memory_space<vmem>>, vector<8x64xf32>
    %23 = arith.addf %21, %22 : vector<8x64xf32>
    %24 = tpu.iota {dimensions = array<i32: 1>} : vector<1x8xi32>
    %c5_i32_11 = arith.constant 5 : i32
    %25 = vector.broadcast %c5_i32_11 : i32 to vector<1x8xi32>
    %26 = arith.cmpi slt, %24, %25 : vector<1x8xi32>
    %cst_12 = arith.constant 0.000000e+00 : f32
    %cst_13 = arith.constant -1.000000e+30 : f32
    %27 = vector.broadcast %cst_12 : f32 to vector<1x8xf32>
    %28 = vector.broadcast %cst_13 : f32 to vector<1x8xf32>
    %29 = arith.select %26, %27, %28 : vector<1x8xi1>, vector<1x8xf32>
    %c0_14 = arith.constant 0 : index
    %c0_15 = arith.constant 0 : index
    %c0_16 = arith.constant 0 : index
    %30 = vector.load %arg6[%c0_14, %c0_15, %c0_16] : memref<2x1x64xf32, #tpu.memory_space<vmem>>, vector<1x1x64xf32>
    %31 = vector.shape_cast %30 : vector<1x1x64xf32> to vector<1x64xf32>
    %c0_17 = arith.constant 0 : index
    %c0_18 = arith.constant 0 : index
    %c0_19 = arith.constant 0 : index
    %32 = vector.load %arg7[%c0_17, %c0_18, %c0_19] : memref<2x1x64xf32, #tpu.memory_space<vmem>>, vector<1x1x64xf32>
    %33 = vector.shape_cast %32 : vector<1x1x64xf32> to vector<1x64xf32>
    %cst_20 = arith.constant dense<0.000000e+00> : vector<8xf32>
    %34 = vector.multi_reduction <add>, %23, %cst_20 [1] : vector<8x64xf32> to vector<8xf32>
    %35 = vector.shape_cast %34 : vector<8xf32> to vector<8x1xf32>
    %cst_21 = arith.constant 6.400000e+01 : f32
    %36 = vector.broadcast %cst_21 : f32 to vector<8x1xf32>
    %37 = arith.divf %35, %36 : vector<8x1xf32>
    %38 = arith.mulf %23, %23 : vector<8x64xf32>
    %cst_22 = arith.constant dense<0.000000e+00> : vector<8xf32>
    %39 = vector.multi_reduction <add>, %38, %cst_22 [1] : vector<8x64xf32> to vector<8xf32>
    %40 = vector.shape_cast %39 : vector<8xf32> to vector<8x1xf32>
    %cst_23 = arith.constant 6.400000e+01 : f32
    %41 = vector.broadcast %cst_23 : f32 to vector<8x1xf32>
    %42 = arith.divf %40, %41 : vector<8x1xf32>
    %43 = arith.mulf %37, %37 : vector<8x1xf32>
    %44 = arith.subf %42, %43 : vector<8x1xf32>
    %45 = vector.broadcast %37 : vector<8x1xf32> to vector<8x64xf32>
    %46 = arith.subf %23, %45 : vector<8x64xf32>
    %cst_24 = arith.constant 9.99999997E-7 : f32
    %47 = vector.broadcast %cst_24 : f32 to vector<8x1xf32>
    %48 = arith.addf %44, %47 : vector<8x1xf32>
    %49 = math.rsqrt %48 : vector<8x1xf32>
    %50 = vector.broadcast %49 : vector<8x1xf32> to vector<8x64xf32>
    %51 = arith.mulf %46, %50 : vector<8x64xf32>
    %52 = vector.broadcast %31 : vector<1x64xf32> to vector<8x64xf32>
    %53 = arith.mulf %51, %52 : vector<8x64xf32>
    %54 = vector.broadcast %33 : vector<1x64xf32> to vector<8x64xf32>
    %55 = arith.addf %53, %54 : vector<8x64xf32>
    %c0_25 = arith.constant 0 : index
    %c0_26 = arith.constant 0 : index
    %c0_27 = arith.constant 0 : index
    %56 = vector.load %arg8[%c0_25, %c0_26, %c0_27] : memref<2x64x192xf32, #tpu.memory_space<vmem>>, vector<1x64x192xf32>
    %57 = vector.shape_cast %56 : vector<1x64x192xf32> to vector<64x192xf32>
    %cst_28 = arith.constant dense<0.000000e+00> : vector<8x192xf32>
    %58 = tpu.matmul %55, %57, %cst_28 {dimension_numbers = #tpu.dot_dimension_numbers<[1], [0], [0], [1], [0, 0, 1, 1], [], []>} : vector<8x64xf32>, vector<64x192xf32>, vector<8x192xf32> -> vector<8x192xf32>
    %c0_29 = arith.constant 0 : index
    %c0_30 = arith.constant 0 : index
    %c0_31 = arith.constant 0 : index
    %59 = vector.load %arg9[%c0_29, %c0_30, %c0_31] : memref<2x1x192xf32, #tpu.memory_space<vmem>>, vector<1x1x192xf32>
    %60 = vector.shape_cast %59 : vector<1x1x192xf32> to vector<1x192xf32>
    %61 = vector.broadcast %60 : vector<1x192xf32> to vector<8x192xf32>
    %62 = arith.addf %58, %61 : vector<8x192xf32>
    %c0_32 = arith.constant 0 : index
    %c0_33 = arith.constant 0 : index
    %c0_34 = arith.constant 0 : index
    %63 = vector.load %arg10[%c0_32, %c0_33, %c0_34] : memref<2x64x64xf32, #tpu.memory_space<vmem>>, vector<1x64x64xf32>
    %64 = vector.shape_cast %63 : vector<1x64x64xf32> to vector<64x64xf32>
    %cst_35 = arith.constant 0.000000e+00 : f32
    %65 = vector.broadcast %cst_35 : f32 to vector<8x64xf32>
    %66 = vector.extract_strided_slice %62 {offsets = [0, 0], sizes = [8, 32], strides = [1, 1]} : vector<8x192xf32> to vector<8x32xf32>
    %67 = vector.extract_strided_slice %62 {offsets = [0, 64], sizes = [8, 32], strides = [1, 1]} : vector<8x192xf32> to vector<8x32xf32>
    %68 = vector.extract_strided_slice %62 {offsets = [0, 128], sizes = [8, 32], strides = [1, 1]} : vector<8x192xf32> to vector<8x32xf32>
    %cst_36 = arith.constant dense<0.000000e+00> : vector<8x8xf32>
    %69 = tpu.matmul %66, %67, %cst_36 {dimension_numbers = #tpu.dot_dimension_numbers<[1], [1], [0], [0], [0, 0, 1, 0], [], []>} : vector<8x32xf32>, vector<8x32xf32>, vector<8x8xf32> -> vector<8x8xf32>
    %cst_37 = arith.constant 0.176776692 : f32
    %70 = vector.broadcast %cst_37 : f32 to vector<8x8xf32>
    %71 = arith.mulf %69, %70 : vector<8x8xf32>
    %72 = vector.broadcast %29 : vector<1x8xf32> to vector<8x8xf32>
    %73 = arith.addf %71, %72 : vector<8x8xf32>
    %cst_38 = arith.constant dense<0xFF800000> : vector<8xf32>
    %74 = vector.multi_reduction <maximumf>, %73, %cst_38 [1] : vector<8x8xf32> to vector<8xf32>
    %75 = vector.shape_cast %74 : vector<8xf32> to vector<8x1xf32>
    %76 = vector.broadcast %75 : vector<8x1xf32> to vector<8x8xf32>
    %77 = arith.subf %73, %76 : vector<8x8xf32>
    %78 = math.exp %77 : vector<8x8xf32>
    %cst_39 = arith.constant dense<0.000000e+00> : vector<8xf32>
    %79 = vector.multi_reduction <add>, %78, %cst_39 [1] : vector<8x8xf32> to vector<8xf32>
    %80 = vector.shape_cast %79 : vector<8xf32> to vector<8x1xf32>
    %81 = tpu.reciprocal %80 {approx = true} : vector<8x1xf32> -> vector<8x1xf32>
    %82 = vector.broadcast %81 : vector<8x1xf32> to vector<8x8xf32>
    %83 = arith.mulf %78, %82 : vector<8x8xf32>
    %cst_40 = arith.constant dense<0.000000e+00> : vector<8x32xf32>
    %84 = tpu.matmul %83, %68, %cst_40 {dimension_numbers = #tpu.dot_dimension_numbers<[1], [0], [0], [1], [0, 0, 1, 1], [], []>} : vector<8x8xf32>, vector<8x32xf32>, vector<8x32xf32> -> vector<8x32xf32>
    %85 = vector.extract_strided_slice %64 {offsets = [0, 0], sizes = [32, 64], strides = [1, 1]} : vector<64x64xf32> to vector<32x64xf32>
    %cst_41 = arith.constant dense<0.000000e+00> : vector<8x64xf32>
    %86 = tpu.matmul %84, %85, %cst_41 {dimension_numbers = #tpu.dot_dimension_numbers<[1], [0], [0], [1], [0, 0, 1, 1], [], []>} : vector<8x32xf32>, vector<32x64xf32>, vector<8x64xf32> -> vector<8x64xf32>
    %87 = arith.addf %65, %86 : vector<8x64xf32>
    %88 = vector.extract_strided_slice %62 {offsets = [0, 32], sizes = [8, 32], strides = [1, 1]} : vector<8x192xf32> to vector<8x32xf32>
    %89 = vector.extract_strided_slice %62 {offsets = [0, 96], sizes = [8, 32], strides = [1, 1]} : vector<8x192xf32> to vector<8x32xf32>
    %90 = vector.extract_strided_slice %62 {offsets = [0, 160], sizes = [8, 32], strides = [1, 1]} : vector<8x192xf32> to vector<8x32xf32>
    %cst_42 = arith.constant dense<0.000000e+00> : vector<8x8xf32>
    %91 = tpu.matmul %88, %89, %cst_42 {dimension_numbers = #tpu.dot_dimension_numbers<[1], [1], [0], [0], [0, 0, 1, 0], [], []>} : vector<8x32xf32>, vector<8x32xf32>, vector<8x8xf32> -> vector<8x8xf32>
    %cst_43 = arith.constant 0.176776692 : f32
    %92 = vector.broadcast %cst_43 : f32 to vector<8x8xf32>
    %93 = arith.mulf %91, %92 : vector<8x8xf32>
    %94 = vector.broadcast %29 : vector<1x8xf32> to vector<8x8xf32>
    %95 = arith.addf %93, %94 : vector<8x8xf32>
    %cst_44 = arith.constant dense<0xFF800000> : vector<8xf32>
    %96 = vector.multi_reduction <maximumf>, %95, %cst_44 [1] : vector<8x8xf32> to vector<8xf32>
    %97 = vector.shape_cast %96 : vector<8xf32> to vector<8x1xf32>
    %98 = vector.broadcast %97 : vector<8x1xf32> to vector<8x8xf32>
    %99 = arith.subf %95, %98 : vector<8x8xf32>
    %100 = math.exp %99 : vector<8x8xf32>
    %cst_45 = arith.constant dense<0.000000e+00> : vector<8xf32>
    %101 = vector.multi_reduction <add>, %100, %cst_45 [1] : vector<8x8xf32> to vector<8xf32>
    %102 = vector.shape_cast %101 : vector<8xf32> to vector<8x1xf32>
    %103 = tpu.reciprocal %102 {approx = true} : vector<8x1xf32> -> vector<8x1xf32>
    %104 = vector.broadcast %103 : vector<8x1xf32> to vector<8x8xf32>
    %105 = arith.mulf %100, %104 : vector<8x8xf32>
    %cst_46 = arith.constant dense<0.000000e+00> : vector<8x32xf32>
    %106 = tpu.matmul %105, %90, %cst_46 {dimension_numbers = #tpu.dot_dimension_numbers<[1], [0], [0], [1], [0, 0, 1, 1], [], []>} : vector<8x8xf32>, vector<8x32xf32>, vector<8x32xf32> -> vector<8x32xf32>
    %107 = vector.extract_strided_slice %64 {offsets = [32, 0], sizes = [32, 64], strides = [1, 1]} : vector<64x64xf32> to vector<32x64xf32>
    %cst_47 = arith.constant dense<0.000000e+00> : vector<8x64xf32>
    %108 = tpu.matmul %106, %107, %cst_47 {dimension_numbers = #tpu.dot_dimension_numbers<[1], [0], [0], [1], [0, 0, 1, 1], [], []>} : vector<8x32xf32>, vector<32x64xf32>, vector<8x64xf32> -> vector<8x64xf32>
    %109 = arith.addf %87, %108 : vector<8x64xf32>
    %110 = arith.addf %23, %109 : vector<8x64xf32>
    %c0_48 = arith.constant 0 : index
    %c0_49 = arith.constant 0 : index
    %c0_50 = arith.constant 0 : index
    %111 = vector.load %arg11[%c0_48, %c0_49, %c0_50] : memref<2x1x64xf32, #tpu.memory_space<vmem>>, vector<1x1x64xf32>
    %112 = vector.shape_cast %111 : vector<1x1x64xf32> to vector<1x64xf32>
    %113 = vector.broadcast %112 : vector<1x64xf32> to vector<8x64xf32>
    %114 = arith.addf %110, %113 : vector<8x64xf32>
    %c0_51 = arith.constant 0 : index
    %c0_52 = arith.constant 0 : index
    %c0_53 = arith.constant 0 : index
    %115 = vector.load %arg12[%c0_51, %c0_52, %c0_53] : memref<2x1x64xf32, #tpu.memory_space<vmem>>, vector<1x1x64xf32>
    %116 = vector.shape_cast %115 : vector<1x1x64xf32> to vector<1x64xf32>
    %c0_54 = arith.constant 0 : index
    %c0_55 = arith.constant 0 : index
    %c0_56 = arith.constant 0 : index
    %117 = vector.load %arg13[%c0_54, %c0_55, %c0_56] : memref<2x1x64xf32, #tpu.memory_space<vmem>>, vector<1x1x64xf32>
    %118 = vector.shape_cast %117 : vector<1x1x64xf32> to vector<1x64xf32>
    %cst_57 = arith.constant dense<0.000000e+00> : vector<8xf32>
    %119 = vector.multi_reduction <add>, %114, %cst_57 [1] : vector<8x64xf32> to vector<8xf32>
    %120 = vector.shape_cast %119 : vector<8xf32> to vector<8x1xf32>
    %cst_58 = arith.constant 6.400000e+01 : f32
    %121 = vector.broadcast %cst_58 : f32 to vector<8x1xf32>
    %122 = arith.divf %120, %121 : vector<8x1xf32>
    %123 = arith.mulf %114, %114 : vector<8x64xf32>
    %cst_59 = arith.constant dense<0.000000e+00> : vector<8xf32>
    %124 = vector.multi_reduction <add>, %123, %cst_59 [1] : vector<8x64xf32> to vector<8xf32>
    %125 = vector.shape_cast %124 : vector<8xf32> to vector<8x1xf32>
    %cst_60 = arith.constant 6.400000e+01 : f32
    %126 = vector.broadcast %cst_60 : f32 to vector<8x1xf32>
    %127 = arith.divf %125, %126 : vector<8x1xf32>
    %128 = arith.mulf %122, %122 : vector<8x1xf32>
    %129 = arith.subf %127, %128 : vector<8x1xf32>
    %130 = vector.broadcast %122 : vector<8x1xf32> to vector<8x64xf32>
    %131 = arith.subf %114, %130 : vector<8x64xf32>
    %cst_61 = arith.constant 9.99999997E-7 : f32
    %132 = vector.broadcast %cst_61 : f32 to vector<8x1xf32>
    %133 = arith.addf %129, %132 : vector<8x1xf32>
    %134 = math.rsqrt %133 : vector<8x1xf32>
    %135 = vector.broadcast %134 : vector<8x1xf32> to vector<8x64xf32>
    %136 = arith.mulf %131, %135 : vector<8x64xf32>
    %137 = vector.broadcast %116 : vector<1x64xf32> to vector<8x64xf32>
    %138 = arith.mulf %136, %137 : vector<8x64xf32>
    %139 = vector.broadcast %118 : vector<1x64xf32> to vector<8x64xf32>
    %140 = arith.addf %138, %139 : vector<8x64xf32>
    %c0_62 = arith.constant 0 : index
    %c0_63 = arith.constant 0 : index
    %c0_64 = arith.constant 0 : index
    %141 = vector.load %arg14[%c0_62, %c0_63, %c0_64] : memref<2x64x256xf32, #tpu.memory_space<vmem>>, vector<1x64x256xf32>
    %142 = vector.shape_cast %141 : vector<1x64x256xf32> to vector<64x256xf32>
    %cst_65 = arith.constant dense<0.000000e+00> : vector<8x256xf32>
    %143 = tpu.matmul %140, %142, %cst_65 {dimension_numbers = #tpu.dot_dimension_numbers<[1], [0], [0], [1], [0, 0, 1, 1], [], []>} : vector<8x64xf32>, vector<64x256xf32>, vector<8x256xf32> -> vector<8x256xf32>
    %c0_66 = arith.constant 0 : index
    %c0_67 = arith.constant 0 : index
    %c0_68 = arith.constant 0 : index
    %144 = vector.load %arg15[%c0_66, %c0_67, %c0_68] : memref<2x1x256xf32, #tpu.memory_space<vmem>>, vector<1x1x256xf32>
    %145 = vector.shape_cast %144 : vector<1x1x256xf32> to vector<1x256xf32>
    %146 = vector.broadcast %145 : vector<1x256xf32> to vector<8x256xf32>
    %147 = arith.addf %143, %146 : vector<8x256xf32>
    %148 = arith.mulf %147, %147 : vector<8x256xf32>
    %149 = arith.mulf %147, %148 : vector<8x256xf32>
    %cst_69 = arith.constant 4.471500e-02 : f32
    %150 = vector.broadcast %cst_69 : f32 to vector<8x256xf32>
    %151 = arith.mulf %150, %149 : vector<8x256xf32>
    %152 = arith.addf %147, %151 : vector<8x256xf32>
    %cst_70 = arith.constant 0.797884583 : f32
    %153 = vector.broadcast %cst_70 : f32 to vector<8x256xf32>
    %154 = arith.mulf %153, %152 : vector<8x256xf32>
    %155 = math.tanh %154 : vector<8x256xf32>
    %cst_71 = arith.constant 1.000000e+00 : f32
    %156 = vector.broadcast %cst_71 : f32 to vector<8x256xf32>
    %157 = arith.addf %156, %155 : vector<8x256xf32>
    %cst_72 = arith.constant 5.000000e-01 : f32
    %158 = vector.broadcast %cst_72 : f32 to vector<8x256xf32>
    %159 = arith.mulf %158, %157 : vector<8x256xf32>
    %160 = arith.mulf %147, %159 : vector<8x256xf32>
    %c0_73 = arith.constant 0 : index
    %c0_74 = arith.constant 0 : index
    %c0_75 = arith.constant 0 : index
    %161 = vector.load %arg16[%c0_73, %c0_74, %c0_75] : memref<2x256x64xf32, #tpu.memory_space<vmem>>, vector<1x256x64xf32>
    %162 = vector.shape_cast %161 : vector<1x256x64xf32> to vector<256x64xf32>
    %cst_76 = arith.constant dense<0.000000e+00> : vector<8x64xf32>
    %163 = tpu.matmul %160, %162, %cst_76 {dimension_numbers = #tpu.dot_dimension_numbers<[1], [0], [0], [1], [0, 0, 1, 1], [], []>} : vector<8x256xf32>, vector<256x64xf32>, vector<8x64xf32> -> vector<8x64xf32>
    %c0_77 = arith.constant 0 : index
    %c0_78 = arith.constant 0 : index
    %c0_79 = arith.constant 0 : index
    %164 = vector.load %arg17[%c0_77, %c0_78, %c0_79] : memref<2x1x64xf32, #tpu.memory_space<vmem>>, vector<1x1x64xf32>
    %165 = vector.shape_cast %164 : vector<1x1x64xf32> to vector<1x64xf32>
    %166 = vector.broadcast %165 : vector<1x64xf32> to vector<8x64xf32>
    %167 = arith.addf %163, %166 : vector<8x64xf32>
    %168 = arith.addf %114, %167 : vector<8x64xf32>
    %c1 = arith.constant 1 : index
    %c0_80 = arith.constant 0 : index
    %c0_81 = arith.constant 0 : index
    %169 = vector.load %arg6[%c1, %c0_80, %c0_81] : memref<2x1x64xf32, #tpu.memory_space<vmem>>, vector<1x1x64xf32>
    %170 = vector.shape_cast %169 : vector<1x1x64xf32> to vector<1x64xf32>
    %c1_82 = arith.constant 1 : index
    %c0_83 = arith.constant 0 : index
    %c0_84 = arith.constant 0 : index
    %171 = vector.load %arg7[%c1_82, %c0_83, %c0_84] : memref<2x1x64xf32, #tpu.memory_space<vmem>>, vector<1x1x64xf32>
    %172 = vector.shape_cast %171 : vector<1x1x64xf32> to vector<1x64xf32>
    %cst_85 = arith.constant dense<0.000000e+00> : vector<8xf32>
    %173 = vector.multi_reduction <add>, %168, %cst_85 [1] : vector<8x64xf32> to vector<8xf32>
    %174 = vector.shape_cast %173 : vector<8xf32> to vector<8x1xf32>
    %cst_86 = arith.constant 6.400000e+01 : f32
    %175 = vector.broadcast %cst_86 : f32 to vector<8x1xf32>
    %176 = arith.divf %174, %175 : vector<8x1xf32>
    %177 = arith.mulf %168, %168 : vector<8x64xf32>
    %cst_87 = arith.constant dense<0.000000e+00> : vector<8xf32>
    %178 = vector.multi_reduction <add>, %177, %cst_87 [1] : vector<8x64xf32> to vector<8xf32>
    %179 = vector.shape_cast %178 : vector<8xf32> to vector<8x1xf32>
    %cst_88 = arith.constant 6.400000e+01 : f32
    %180 = vector.broadcast %cst_88 : f32 to vector<8x1xf32>
    %181 = arith.divf %179, %180 : vector<8x1xf32>
    %182 = arith.mulf %176, %176 : vector<8x1xf32>
    %183 = arith.subf %181, %182 : vector<8x1xf32>
    %184 = vector.broadcast %176 : vector<8x1xf32> to vector<8x64xf32>
    %185 = arith.subf %168, %184 : vector<8x64xf32>
    %cst_89 = arith.constant 9.99999997E-7 : f32
    %186 = vector.broadcast %cst_89 : f32 to vector<8x1xf32>
    %187 = arith.addf %183, %186 : vector<8x1xf32>
    %188 = math.rsqrt %187 : vector<8x1xf32>
    %189 = vector.broadcast %188 : vector<8x1xf32> to vector<8x64xf32>
    %190 = arith.mulf %185, %189 : vector<8x64xf32>
    %191 = vector.broadcast %170 : vector<1x64xf32> to vector<8x64xf32>
    %192 = arith.mulf %190, %191 : vector<8x64xf32>
    %193 = vector.broadcast %172 : vector<1x64xf32> to vector<8x64xf32>
    %194 = arith.addf %192, %193 : vector<8x64xf32>
    %c1_90 = arith.constant 1 : index
    %c0_91 = arith.constant 0 : index
    %c0_92 = arith.constant 0 : index
    %195 = vector.load %arg8[%c1_90, %c0_91, %c0_92] : memref<2x64x192xf32, #tpu.memory_space<vmem>>, vector<1x64x192xf32>
    %196 = vector.shape_cast %195 : vector<1x64x192xf32> to vector<64x192xf32>
    %cst_93 = arith.constant dense<0.000000e+00> : vector<8x192xf32>
    %197 = tpu.matmul %194, %196, %cst_93 {dimension_numbers = #tpu.dot_dimension_numbers<[1], [0], [0], [1], [0, 0, 1, 1], [], []>} : vector<8x64xf32>, vector<64x192xf32>, vector<8x192xf32> -> vector<8x192xf32>
    %c1_94 = arith.constant 1 : index
    %c0_95 = arith.constant 0 : index
    %c0_96 = arith.constant 0 : index
    %198 = vector.load %arg9[%c1_94, %c0_95, %c0_96] : memref<2x1x192xf32, #tpu.memory_space<vmem>>, vector<1x1x192xf32>
    %199 = vector.shape_cast %198 : vector<1x1x192xf32> to vector<1x192xf32>
    %200 = vector.broadcast %199 : vector<1x192xf32> to vector<8x192xf32>
    %201 = arith.addf %197, %200 : vector<8x192xf32>
    %c1_97 = arith.constant 1 : index
    %c0_98 = arith.constant 0 : index
    %c0_99 = arith.constant 0 : index
    %202 = vector.load %arg10[%c1_97, %c0_98, %c0_99] : memref<2x64x64xf32, #tpu.memory_space<vmem>>, vector<1x64x64xf32>
    %203 = vector.shape_cast %202 : vector<1x64x64xf32> to vector<64x64xf32>
    %cst_100 = arith.constant 0.000000e+00 : f32
    %204 = vector.broadcast %cst_100 : f32 to vector<8x64xf32>
    %205 = vector.extract_strided_slice %201 {offsets = [0, 0], sizes = [8, 32], strides = [1, 1]} : vector<8x192xf32> to vector<8x32xf32>
    %206 = vector.extract_strided_slice %201 {offsets = [0, 64], sizes = [8, 32], strides = [1, 1]} : vector<8x192xf32> to vector<8x32xf32>
    %207 = vector.extract_strided_slice %201 {offsets = [0, 128], sizes = [8, 32], strides = [1, 1]} : vector<8x192xf32> to vector<8x32xf32>
    %cst_101 = arith.constant dense<0.000000e+00> : vector<8x8xf32>
    %208 = tpu.matmul %205, %206, %cst_101 {dimension_numbers = #tpu.dot_dimension_numbers<[1], [1], [0], [0], [0, 0, 1, 0], [], []>} : vector<8x32xf32>, vector<8x32xf32>, vector<8x8xf32> -> vector<8x8xf32>
    %cst_102 = arith.constant 0.176776692 : f32
    %209 = vector.broadcast %cst_102 : f32 to vector<8x8xf32>
    %210 = arith.mulf %208, %209 : vector<8x8xf32>
    %211 = vector.broadcast %29 : vector<1x8xf32> to vector<8x8xf32>
    %212 = arith.addf %210, %211 : vector<8x8xf32>
    %cst_103 = arith.constant dense<0xFF800000> : vector<8xf32>
    %213 = vector.multi_reduction <maximumf>, %212, %cst_103 [1] : vector<8x8xf32> to vector<8xf32>
    %214 = vector.shape_cast %213 : vector<8xf32> to vector<8x1xf32>
    %215 = vector.broadcast %214 : vector<8x1xf32> to vector<8x8xf32>
    %216 = arith.subf %212, %215 : vector<8x8xf32>
    %217 = math.exp %216 : vector<8x8xf32>
    %cst_104 = arith.constant dense<0.000000e+00> : vector<8xf32>
    %218 = vector.multi_reduction <add>, %217, %cst_104 [1] : vector<8x8xf32> to vector<8xf32>
    %219 = vector.shape_cast %218 : vector<8xf32> to vector<8x1xf32>
    %220 = tpu.reciprocal %219 {approx = true} : vector<8x1xf32> -> vector<8x1xf32>
    %221 = vector.broadcast %220 : vector<8x1xf32> to vector<8x8xf32>
    %222 = arith.mulf %217, %221 : vector<8x8xf32>
    %cst_105 = arith.constant dense<0.000000e+00> : vector<8x32xf32>
    %223 = tpu.matmul %222, %207, %cst_105 {dimension_numbers = #tpu.dot_dimension_numbers<[1], [0], [0], [1], [0, 0, 1, 1], [], []>} : vector<8x8xf32>, vector<8x32xf32>, vector<8x32xf32> -> vector<8x32xf32>
    %224 = vector.extract_strided_slice %203 {offsets = [0, 0], sizes = [32, 64], strides = [1, 1]} : vector<64x64xf32> to vector<32x64xf32>
    %cst_106 = arith.constant dense<0.000000e+00> : vector<8x64xf32>
    %225 = tpu.matmul %223, %224, %cst_106 {dimension_numbers = #tpu.dot_dimension_numbers<[1], [0], [0], [1], [0, 0, 1, 1], [], []>} : vector<8x32xf32>, vector<32x64xf32>, vector<8x64xf32> -> vector<8x64xf32>
    %226 = arith.addf %204, %225 : vector<8x64xf32>
    %227 = vector.extract_strided_slice %201 {offsets = [0, 32], sizes = [8, 32], strides = [1, 1]} : vector<8x192xf32> to vector<8x32xf32>
    %228 = vector.extract_strided_slice %201 {offsets = [0, 96], sizes = [8, 32], strides = [1, 1]} : vector<8x192xf32> to vector<8x32xf32>
    %229 = vector.extract_strided_slice %201 {offsets = [0, 160], sizes = [8, 32], strides = [1, 1]} : vector<8x192xf32> to vector<8x32xf32>
    %cst_107 = arith.constant dense<0.000000e+00> : vector<8x8xf32>
    %230 = tpu.matmul %227, %228, %cst_107 {dimension_numbers = #tpu.dot_dimension_numbers<[1], [1], [0], [0], [0, 0, 1, 0], [], []>} : vector<8x32xf32>, vector<8x32xf32>, vector<8x8xf32> -> vector<8x8xf32>
    %cst_108 = arith.constant 0.176776692 : f32
    %231 = vector.broadcast %cst_108 : f32 to vector<8x8xf32>
    %232 = arith.mulf %230, %231 : vector<8x8xf32>
    %233 = vector.broadcast %29 : vector<1x8xf32> to vector<8x8xf32>
    %234 = arith.addf %232, %233 : vector<8x8xf32>
    %cst_109 = arith.constant dense<0xFF800000> : vector<8xf32>
    %235 = vector.multi_reduction <maximumf>, %234, %cst_109 [1] : vector<8x8xf32> to vector<8xf32>
    %236 = vector.shape_cast %235 : vector<8xf32> to vector<8x1xf32>
    %237 = vector.broadcast %236 : vector<8x1xf32> to vector<8x8xf32>
    %238 = arith.subf %234, %237 : vector<8x8xf32>
    %239 = math.exp %238 : vector<8x8xf32>
    %cst_110 = arith.constant dense<0.000000e+00> : vector<8xf32>
    %240 = vector.multi_reduction <add>, %239, %cst_110 [1] : vector<8x8xf32> to vector<8xf32>
    %241 = vector.shape_cast %240 : vector<8xf32> to vector<8x1xf32>
    %242 = tpu.reciprocal %241 {approx = true} : vector<8x1xf32> -> vector<8x1xf32>
    %243 = vector.broadcast %242 : vector<8x1xf32> to vector<8x8xf32>
    %244 = arith.mulf %239, %243 : vector<8x8xf32>
    %cst_111 = arith.constant dense<0.000000e+00> : vector<8x32xf32>
    %245 = tpu.matmul %244, %229, %cst_111 {dimension_numbers = #tpu.dot_dimension_numbers<[1], [0], [0], [1], [0, 0, 1, 1], [], []>} : vector<8x8xf32>, vector<8x32xf32>, vector<8x32xf32> -> vector<8x32xf32>
    %246 = vector.extract_strided_slice %203 {offsets = [32, 0], sizes = [32, 64], strides = [1, 1]} : vector<64x64xf32> to vector<32x64xf32>
    %cst_112 = arith.constant dense<0.000000e+00> : vector<8x64xf32>
    %247 = tpu.matmul %245, %246, %cst_112 {dimension_numbers = #tpu.dot_dimension_numbers<[1], [0], [0], [1], [0, 0, 1, 1], [], []>} : vector<8x32xf32>, vector<32x64xf32>, vector<8x64xf32> -> vector<8x64xf32>
    %248 = arith.addf %226, %247 : vector<8x64xf32>
    %249 = arith.addf %168, %248 : vector<8x64xf32>
    %c1_113 = arith.constant 1 : index
    %c0_114 = arith.constant 0 : index
    %c0_115 = arith.constant 0 : index
    %250 = vector.load %arg11[%c1_113, %c0_114, %c0_115] : memref<2x1x64xf32, #tpu.memory_space<vmem>>, vector<1x1x64xf32>
    %251 = vector.shape_cast %250 : vector<1x1x64xf32> to vector<1x64xf32>
    %252 = vector.broadcast %251 : vector<1x64xf32> to vector<8x64xf32>
    %253 = arith.addf %249, %252 : vector<8x64xf32>
    %c1_116 = arith.constant 1 : index
    %c0_117 = arith.constant 0 : index
    %c0_118 = arith.constant 0 : index
    %254 = vector.load %arg12[%c1_116, %c0_117, %c0_118] : memref<2x1x64xf32, #tpu.memory_space<vmem>>, vector<1x1x64xf32>
    %255 = vector.shape_cast %254 : vector<1x1x64xf32> to vector<1x64xf32>
    %c1_119 = arith.constant 1 : index
    %c0_120 = arith.constant 0 : index
    %c0_121 = arith.constant 0 : index
    %256 = vector.load %arg13[%c1_119, %c0_120, %c0_121] : memref<2x1x64xf32, #tpu.memory_space<vmem>>, vector<1x1x64xf32>
    %257 = vector.shape_cast %256 : vector<1x1x64xf32> to vector<1x64xf32>
    %cst_122 = arith.constant dense<0.000000e+00> : vector<8xf32>
    %258 = vector.multi_reduction <add>, %253, %cst_122 [1] : vector<8x64xf32> to vector<8xf32>
    %259 = vector.shape_cast %258 : vector<8xf32> to vector<8x1xf32>
    %cst_123 = arith.constant 6.400000e+01 : f32
    %260 = vector.broadcast %cst_123 : f32 to vector<8x1xf32>
    %261 = arith.divf %259, %260 : vector<8x1xf32>
    %262 = arith.mulf %253, %253 : vector<8x64xf32>
    %cst_124 = arith.constant dense<0.000000e+00> : vector<8xf32>
    %263 = vector.multi_reduction <add>, %262, %cst_124 [1] : vector<8x64xf32> to vector<8xf32>
    %264 = vector.shape_cast %263 : vector<8xf32> to vector<8x1xf32>
    %cst_125 = arith.constant 6.400000e+01 : f32
    %265 = vector.broadcast %cst_125 : f32 to vector<8x1xf32>
    %266 = arith.divf %264, %265 : vector<8x1xf32>
    %267 = arith.mulf %261, %261 : vector<8x1xf32>
    %268 = arith.subf %266, %267 : vector<8x1xf32>
    %269 = vector.broadcast %261 : vector<8x1xf32> to vector<8x64xf32>
    %270 = arith.subf %253, %269 : vector<8x64xf32>
    %cst_126 = arith.constant 9.99999997E-7 : f32
    %271 = vector.broadcast %cst_126 : f32 to vector<8x1xf32>
    %272 = arith.addf %268, %271 : vector<8x1xf32>
    %273 = math.rsqrt %272 : vector<8x1xf32>
    %274 = vector.broadcast %273 : vector<8x1xf32> to vector<8x64xf32>
    %275 = arith.mulf %270, %274 : vector<8x64xf32>
    %276 = vector.broadcast %255 : vector<1x64xf32> to vector<8x64xf32>
    %277 = arith.mulf %275, %276 : vector<8x64xf32>
    %278 = vector.broadcast %257 : vector<1x64xf32> to vector<8x64xf32>
    %279 = arith.addf %277, %278 : vector<8x64xf32>
    %c1_127 = arith.constant 1 : index
    %c0_128 = arith.constant 0 : index
    %c0_129 = arith.constant 0 : index
    %280 = vector.load %arg14[%c1_127, %c0_128, %c0_129] : memref<2x64x256xf32, #tpu.memory_space<vmem>>, vector<1x64x256xf32>
    %281 = vector.shape_cast %280 : vector<1x64x256xf32> to vector<64x256xf32>
    %cst_130 = arith.constant dense<0.000000e+00> : vector<8x256xf32>
    %282 = tpu.matmul %279, %281, %cst_130 {dimension_numbers = #tpu.dot_dimension_numbers<[1], [0], [0], [1], [0, 0, 1, 1], [], []>} : vector<8x64xf32>, vector<64x256xf32>, vector<8x256xf32> -> vector<8x256xf32>
    %c1_131 = arith.constant 1 : index
    %c0_132 = arith.constant 0 : index
    %c0_133 = arith.constant 0 : index
    %283 = vector.load %arg15[%c1_131, %c0_132, %c0_133] : memref<2x1x256xf32, #tpu.memory_space<vmem>>, vector<1x1x256xf32>
    %284 = vector.shape_cast %283 : vector<1x1x256xf32> to vector<1x256xf32>
    %285 = vector.broadcast %284 : vector<1x256xf32> to vector<8x256xf32>
    %286 = arith.addf %282, %285 : vector<8x256xf32>
    %287 = arith.mulf %286, %286 : vector<8x256xf32>
    %288 = arith.mulf %286, %287 : vector<8x256xf32>
    %cst_134 = arith.constant 4.471500e-02 : f32
    %289 = vector.broadcast %cst_134 : f32 to vector<8x256xf32>
    %290 = arith.mulf %289, %288 : vector<8x256xf32>
    %291 = arith.addf %286, %290 : vector<8x256xf32>
    %cst_135 = arith.constant 0.797884583 : f32
    %292 = vector.broadcast %cst_135 : f32 to vector<8x256xf32>
    %293 = arith.mulf %292, %291 : vector<8x256xf32>
    %294 = math.tanh %293 : vector<8x256xf32>
    %cst_136 = arith.constant 1.000000e+00 : f32
    %295 = vector.broadcast %cst_136 : f32 to vector<8x256xf32>
    %296 = arith.addf %295, %294 : vector<8x256xf32>
    %cst_137 = arith.constant 5.000000e-01 : f32
    %297 = vector.broadcast %cst_137 : f32 to vector<8x256xf32>
    %298 = arith.mulf %297, %296 : vector<8x256xf32>
    %299 = arith.mulf %286, %298 : vector<8x256xf32>
    %c1_138 = arith.constant 1 : index
    %c0_139 = arith.constant 0 : index
    %c0_140 = arith.constant 0 : index
    %300 = vector.load %arg16[%c1_138, %c0_139, %c0_140] : memref<2x256x64xf32, #tpu.memory_space<vmem>>, vector<1x256x64xf32>
    %301 = vector.shape_cast %300 : vector<1x256x64xf32> to vector<256x64xf32>
    %cst_141 = arith.constant dense<0.000000e+00> : vector<8x64xf32>
    %302 = tpu.matmul %299, %301, %cst_141 {dimension_numbers = #tpu.dot_dimension_numbers<[1], [0], [0], [1], [0, 0, 1, 1], [], []>} : vector<8x256xf32>, vector<256x64xf32>, vector<8x64xf32> -> vector<8x64xf32>
    %c1_142 = arith.constant 1 : index
    %c0_143 = arith.constant 0 : index
    %c0_144 = arith.constant 0 : index
    %303 = vector.load %arg17[%c1_142, %c0_143, %c0_144] : memref<2x1x64xf32, #tpu.memory_space<vmem>>, vector<1x1x64xf32>
    %304 = vector.shape_cast %303 : vector<1x1x64xf32> to vector<1x64xf32>
    %305 = vector.broadcast %304 : vector<1x64xf32> to vector<8x64xf32>
    %306 = arith.addf %302, %305 : vector<8x64xf32>
    %307 = arith.addf %253, %306 : vector<8x64xf32>
    %c0_145 = arith.constant 0 : index
    %c0_146 = arith.constant 0 : index
    %308 = vector.load %arg18[%c0_145, %c0_146] : memref<1x64xf32, #tpu.memory_space<vmem>>, vector<1x64xf32>
    %c0_147 = arith.constant 0 : index
    %c0_148 = arith.constant 0 : index
    %309 = vector.load %arg19[%c0_147, %c0_148] : memref<1x64xf32, #tpu.memory_space<vmem>>, vector<1x64xf32>
    %cst_149 = arith.constant dense<0.000000e+00> : vector<8xf32>
    %310 = vector.multi_reduction <add>, %307, %cst_149 [1] : vector<8x64xf32> to vector<8xf32>
    %311 = vector.shape_cast %310 : vector<8xf32> to vector<8x1xf32>
    %cst_150 = arith.constant 6.400000e+01 : f32
    %312 = vector.broadcast %cst_150 : f32 to vector<8x1xf32>
    %313 = arith.divf %311, %312 : vector<8x1xf32>
    %314 = arith.mulf %307, %307 : vector<8x64xf32>
    %cst_151 = arith.constant dense<0.000000e+00> : vector<8xf32>
    %315 = vector.multi_reduction <add>, %314, %cst_151 [1] : vector<8x64xf32> to vector<8xf32>
    %316 = vector.shape_cast %315 : vector<8xf32> to vector<8x1xf32>
    %cst_152 = arith.constant 6.400000e+01 : f32
    %317 = vector.broadcast %cst_152 : f32 to vector<8x1xf32>
    %318 = arith.divf %316, %317 : vector<8x1xf32>
    %319 = arith.mulf %313, %313 : vector<8x1xf32>
    %320 = arith.subf %318, %319 : vector<8x1xf32>
    %321 = vector.broadcast %313 : vector<8x1xf32> to vector<8x64xf32>
    %322 = arith.subf %307, %321 : vector<8x64xf32>
    %cst_153 = arith.constant 9.99999997E-7 : f32
    %323 = vector.broadcast %cst_153 : f32 to vector<8x1xf32>
    %324 = arith.addf %320, %323 : vector<8x1xf32>
    %325 = math.rsqrt %324 : vector<8x1xf32>
    %326 = vector.broadcast %325 : vector<8x1xf32> to vector<8x64xf32>
    %327 = arith.mulf %322, %326 : vector<8x64xf32>
    %328 = vector.broadcast %308 : vector<1x64xf32> to vector<8x64xf32>
    %329 = arith.mulf %327, %328 : vector<8x64xf32>
    %330 = vector.broadcast %309 : vector<1x64xf32> to vector<8x64xf32>
    %331 = arith.addf %329, %330 : vector<8x64xf32>
    %332 = vector.extract_strided_slice %331 {offsets = [0, 0], sizes = [1, 64], strides = [1, 1]} : vector<8x64xf32> to vector<1x64xf32>
    %c0_154 = arith.constant 0 : index
    %c0_155 = arith.constant 0 : index
    %333 = vector.load %arg20[%c0_154, %c0_155] : memref<64x128xf32, #tpu.memory_space<vmem>>, vector<64x128xf32>
    %cst_156 = arith.constant dense<0.000000e+00> : vector<1x128xf32>
    %334 = tpu.matmul %332, %333, %cst_156 {dimension_numbers = #tpu.dot_dimension_numbers<[1], [0], [0], [1], [0, 0, 1, 1], [], []>} : vector<1x64xf32>, vector<64x128xf32>, vector<1x128xf32> -> vector<1x128xf32>
    %c0_157 = arith.constant 0 : index
    %c0_158 = arith.constant 0 : index
    %335 = vector.load %arg21[%c0_157, %c0_158] : memref<1x128xf32, #tpu.memory_space<vmem>>, vector<1x128xf32>
    %336 = arith.addf %334, %335 : vector<1x128xf32>
    %c0_159 = arith.constant 0 : index
    %c0_160 = arith.constant 0 : index
    %c0_161 = arith.constant 0 : index
    %337 = vector.load %arg22[%c0_159, %c0_160, %c0_161] : memref<1x1x128xf32, #tpu.memory_space<vmem>>, vector<1x1x128xf32>
    %338 = vector.shape_cast %337 : vector<1x1x128xf32> to vector<1x128xf32>
    %339 = vector.shape_cast %336 : vector<1x128xf32> to vector<1x1x128xf32>
    tpu.vector_store %arg22[%c0_159, %c0_160, %c0_161], %339 {strides = array<i32>} : memref<1x1x128xf32, #tpu.memory_space<vmem>>, vector<1x1x128xf32>,
    return
  }
  func.func @transform_0(%arg0: i32) -> (i32, i32, i32) {
    %c0_i32 = arith.constant 0 : i32
    %c0_i32_0 = arith.constant 0 : i32
    %c0_i32_1 = arith.constant 0 : i32
    return %arg0, %c0_i32, %c0_i32_0 : i32, i32, i32
  }
  func.func @transform_1(%arg0: i32) -> (i32, i32) {
    %c0_i32 = arith.constant 0 : i32
    %c0_i32_0 = arith.constant 0 : i32
    %c0_i32_1 = arith.constant 0 : i32
    return %c0_i32, %c0_i32_0 : i32, i32
  }
  func.func @transform_2(%arg0: i32) -> (i32, i32) {
    %c0_i32 = arith.constant 0 : i32
    %c0_i32_0 = arith.constant 0 : i32
    %c0_i32_1 = arith.constant 0 : i32
    return %c0_i32, %c0_i32_0 : i32, i32
  }
  func.func @transform_3(%arg0: i32) -> (i32, i32) {
    %c0_i32 = arith.constant 0 : i32
    %c0_i32_0 = arith.constant 0 : i32
    %c0_i32_1 = arith.constant 0 : i32
    return %c0_i32, %c0_i32_0 : i32, i32
  }
  func.func @transform_4(%arg0: i32) -> (i32, i32) {
    %c0_i32 = arith.constant 0 : i32
    %c0_i32_0 = arith.constant 0 : i32
    %c0_i32_1 = arith.constant 0 : i32
    return %c0_i32, %c0_i32_0 : i32, i32
  }
  func.func @transform_5(%arg0: i32) -> (i32, i32, i32) {
    %c0_i32 = arith.constant 0 : i32
    %c0_i32_0 = arith.constant 0 : i32
    %c0_i32_1 = arith.constant 0 : i32
    %c0_i32_2 = arith.constant 0 : i32
    return %c0_i32, %c0_i32_0, %c0_i32_1 : i32, i32, i32
  }
  func.func @transform_6(%arg0: i32) -> (i32, i32, i32) {
    %c0_i32 = arith.constant 0 : i32
    %c0_i32_0 = arith.constant 0 : i32
    %c0_i32_1 = arith.constant 0 : i32
    %c0_i32_2 = arith.constant 0 : i32
    return %c0_i32, %c0_i32_0, %c0_i32_1 : i32, i32, i32
  }
  func.func @transform_7(%arg0: i32) -> (i32, i32, i32) {
    %c0_i32 = arith.constant 0 : i32
    %c0_i32_0 = arith.constant 0 : i32
    %c0_i32_1 = arith.constant 0 : i32
    %c0_i32_2 = arith.constant 0 : i32
    return %c0_i32, %c0_i32_0, %c0_i32_1 : i32, i32, i32
  }
  func.func @transform_8(%arg0: i32) -> (i32, i32, i32) {
    %c0_i32 = arith.constant 0 : i32
    %c0_i32_0 = arith.constant 0 : i32
    %c0_i32_1 = arith.constant 0 : i32
    %c0_i32_2 = arith.constant 0 : i32
    return %c0_i32, %c0_i32_0, %c0_i32_1 : i32, i32, i32
  }
  func.func @transform_9(%arg0: i32) -> (i32, i32, i32) {
    %c0_i32 = arith.constant 0 : i32
    %c0_i32_0 = arith.constant 0 : i32
    %c0_i32_1 = arith.constant 0 : i32
    %c0_i32_2 = arith.constant 0 : i32
    return %c0_i32, %c0_i32_0, %c0_i32_1 : i32, i32, i32
  }
  func.func @transform_10(%arg0: i32) -> (i32, i32, i32) {
    %c0_i32 = arith.constant 0 : i32
    %c0_i32_0 = arith.constant 0 : i32
    %c0_i32_1 = arith.constant 0 : i32
    %c0_i32_2 = arith.constant 0 : i32
    return %c0_i32, %c0_i32_0, %c0_i32_1 : i32, i32, i32
  }
  func.func @transform_11(%arg0: i32) -> (i32, i32, i32) {
    %c0_i32 = arith.constant 0 : i32
    %c0_i32_0 = arith.constant 0 : i32
    %c0_i32_1 = arith.constant 0 : i32
    %c0_i32_2 = arith.constant 0 : i32
    return %c0_i32, %c0_i32_0, %c0_i32_1 : i32, i32, i32
  }
  func.func @transform_12(%arg0: i32) -> (i32, i32, i32) {
    %c0_i32 = arith.constant 0 : i32
    %c0_i32_0 = arith.constant 0 : i32
    %c0_i32_1 = arith.constant 0 : i32
    %c0_i32_2 = arith.constant 0 : i32
    return %c0_i32, %c0_i32_0, %c0_i32_1 : i32, i32, i32
  }
  func.func @transform_13(%arg0: i32) -> (i32, i32, i32) {
    %c0_i32 = arith.constant 0 : i32
    %c0_i32_0 = arith.constant 0 : i32
    %c0_i32_1 = arith.constant 0 : i32
    %c0_i32_2 = arith.constant 0 : i32
    return %c0_i32, %c0_i32_0, %c0_i32_1 : i32, i32, i32
  }
  func.func @transform_14(%arg0: i32) -> (i32, i32, i32) {
    %c0_i32 = arith.constant 0 : i32
    %c0_i32_0 = arith.constant 0 : i32
    %c0_i32_1 = arith.constant 0 : i32
    %c0_i32_2 = arith.constant 0 : i32
    return %c0_i32, %c0_i32_0, %c0_i32_1 : i32, i32, i32
  }
  func.func @transform_15(%arg0: i32) -> (i32, i32, i32) {
    %c0_i32 = arith.constant 0 : i32
    %c0_i32_0 = arith.constant 0 : i32
    %c0_i32_1 = arith.constant 0 : i32
    %c0_i32_2 = arith.constant 0 : i32
    return %c0_i32, %c0_i32_0, %c0_i32_1 : i32, i32, i32
  }
  func.func @transform_16(%arg0: i32) -> (i32, i32, i32) {
    %c0_i32 = arith.constant 0 : i32
    %c0_i32_0 = arith.constant 0 : i32
    %c0_i32_1 = arith.constant 0 : i32
    %c0_i32_2 = arith.constant 0 : i32
    return %c0_i32, %c0_i32_0, %c0_i32_1 : i32, i32, i32
  }
  func.func @transform_17(%arg0: i32) -> (i32, i32) {
    %c0_i32 = arith.constant 0 : i32
    %c0_i32_0 = arith.constant 0 : i32
    %c0_i32_1 = arith.constant 0 : i32
    return %c0_i32, %c0_i32_0 : i32, i32
  }
  func.func @transform_18(%arg0: i32) -> (i32, i32) {
    %c0_i32 = arith.constant 0 : i32
    %c0_i32_0 = arith.constant 0 : i32
    %c0_i32_1 = arith.constant 0 : i32
    return %c0_i32, %c0_i32_0 : i32, i32
  }
  func.func @transform_19(%arg0: i32) -> (i32, i32) {
    %c0_i32 = arith.constant 0 : i32
    %c0_i32_0 = arith.constant 0 : i32
    %c0_i32_1 = arith.constant 0 : i32
    return %c0_i32, %c0_i32_0 : i32, i32
  }
  func.func @transform_20(%arg0: i32) -> (i32, i32) {
    %c0_i32 = arith.constant 0 : i32
    %c0_i32_0 = arith.constant 0 : i32
    %c0_i32_1 = arith.constant 0 : i32
    return %c0_i32, %c0_i32_0 : i32, i32
  }
  func.func @transform_21(%arg0: i32) -> (i32, i32, i32) {
    %c0_i32 = arith.constant 0 : i32
    %c0_i32_0 = arith.constant 0 : i32
    %c0_i32_1 = arith.constant 0 : i32
    return %arg0, %c0_i32, %c0_i32_0 : i32, i32, i32
  }
}

</mosaic_0001>

<bundles_post_ra>
// kernel: dino_classifier_forward.1
= control target key start
LH: loop header
LB: loop body
LE: loop exit
PB: predicated region body
PF: predicated region fallthrough
CT: control target
= control target key end

     0   :  { %s5015_s0 = inlined_call_operand.vmem [shape: f32[2,8,768], index: 0, kind: input, shape index: {}]   ;;  %s5016_s1 = inlined_call_operand.vmem [shape: f32[768,64], index: 1, kind: input, shape index: {}]   ;;  %s5017_s2 = inlined_call_operand.vmem [shape: f32[1,64], index: 2, kind: input, shape index: {}]   ;;  %s5018_s3 = inlined_call_operand.vmem [shape: f32[1,64], index: 3, kind: input, shape index: {}]   ;;  %s5019_s4 = inlined_call_operand.vmem [shape: f32[8,64], index: 4, kind: input, shape index: {}]   ;;  %s5020_s5 = inlined_call_operand.vmem [shape: f32[2,1,64], index: 5, kind: input, shape index: {}]   ;;  %s5021_s6 = inlined_call_operand.vmem [shape: f32[2,1,64], index: 6, kind: input, shape index: {}]   ;;  %s5022_s7 = inlined_call_operand.vmem [shape: f32[2,64,192], index: 7, kind: input, shape index: {}]   ;;  %s5023_s8 = inlined_call_operand.vmem [shape: f32[2,1,192], index: 8, kind: input, shape index: {}]   ;;  %s5024_s9 = inlined_call_operand.vmem [shape: f32[2,64,64], index: 9, kind: input, shape index: {}]   ;;  %s5025_s10 = inlined_call_operand.vmem [shape: f32[2,1,64], index: 10, kind: input, shape index: {}]   ;;  %s5026_s11 = inlined_call_operand.vmem [shape: f32[2,1,64], index: 11, kind: input, shape index: {}]   ;;  %s5027_s12 = inlined_call_operand.vmem [shape: f32[2,1,64], index: 12, kind: input, shape index: {}]   ;;  %s5028_s13 = inlined_call_operand.vmem [shape: f32[2,64,256], index: 13, kind: input, shape index: {}]   ;;  %s5029_s14 = inlined_call_operand.vmem [shape: f32[2,1,256], index: 14, kind: input, shape index: {}]   ;;  %s5030_s15 = inlined_call_operand.vmem [shape: f32[2,256,64], index: 15, kind: input, shape index: {}]   ;;  %s5031_s16 = inlined_call_operand.vmem [shape: f32[2,1,64], index: 16, kind: input, shape index: {}]   ;;  %s5032_s17 = inlined_call_operand.vmem [shape: f32[1,64], index: 17, kind: input, shape index: {}]   ;;  %s5033_s18 = inlined_call_operand.vmem [shape: f32[1,64], index: 18, kind: input, shape index: {}]   ;;  %s5034_s19 = inlined_call_operand.vmem [shape: f32[64,128], index: 19, kind: input, shape index: {}]   ;;  %s5035_s20 = inlined_call_operand.vmem [shape: f32[1,128], index: 20, kind: input, shape index: {}]   ;;  %s5036_s21 = inlined_call_operand.hbm [shape: f32[2,1,128], index: 21, kind: output, shape index: {}]  }
   0x1   :  { %5048 = sst [smem:[#allocation11_spill]] %s5015_s0 }
   0x2   :  { %5049 = sst [smem:[#allocation12_spill]] %s5016_s1 }
   0x3   :  { %5050 = sst [smem:[#allocation13_spill]] %s5017_s2 }
   0x4   :  { %5051 = sst [smem:[#allocation14_spill]] %s5018_s3 }
   0x5   :  { %5052 = sst [smem:[#allocation15_spill]] %s5019_s4 }
   0x6   :  { %5053 = sst [smem:[#allocation16_spill]] %s5020_s5 }
   0x7   :  { %5054 = sst [smem:[#allocation17_spill]] %s5035_s20 }
   0x8   :  { %5055 = sst [smem:[#allocation18_spill]] %s5036_s21 }
   0x9   :  { %26 = vsyncpa [#allocation3], 0 }
   0xa   :  { %28 = vsyncpa [#allocation3 + $0x1], 0  ;;  %s3941_s2 = smov 0   ;;  %s3943_s25 = smov 0  }
   0xb   :  { %s3945_s26 = smov 0   ;;  %s3947_s27 = smov 0  }
   0xc LB: > { %5056 = sst [smem:[#allocation5_spill]] %s3809_s2  ;;  %s3962_s3 = sadd.s32 4294967295, %s3821_s27   ;;  %s3821_s27 = sphi %s3947_s27, %s5076_s27   ;;  %s3817_s26 = sphi %s3945_s26, %s5078_s26   ;;  %s3813_s25 = sphi %s3943_s25, %s5080_s25   ;;  %s3809_s2 = sphi %s3941_s2, %s5079_s2  }
   0xd   : > { %5057 = sst [smem:[#allocation6_spill]] %s3817_s26  ;;  %s2970_s28 = sadd.s32 4294967294, %s3821_s27  }
   0xe   : > { %5058 = sst [smem:[#allocation7_spill]] %s3821_s27  ;;  %s3966_s29 = sadd.s32 1, %s3821_s27  }
   0xf   : > { %5059 = sst [smem:[#allocation8_spill]] %s3966_s29  ;;  %s487_s0 = sadd.s32 1, %s3817_s26 }
  0x10   : > { %s484_s4 = ssub.s32 %s3821_s27, %s3966_s29  ;;  %p497_p0 = scmp.ne.s32.totalorder %s3817_s26, %s3813_s25 }
  0x11   : > { %p485_p1 = scmp.eq.s32.totalorder %s484_s4, 0  ;;  %p498_p2 = scmp.eq.s32.totalorder %s3962_s3, 1 }
  0x12   : > { %p503_p3 = scmp.ne.s32.totalorder %s3813_s25, %s3809_s2  ;;  %p504_p4 = scmp.eq.s32.totalorder %s2970_s28, 1 }
  0x13   : > { %s3977_s30 = scalar_select %p485_p1, %s3817_s26, %s487_s0  }
  0x14   : > { %p3979_p5 = por %p498_p2, %p497_p0  ;;  %p3983_p6 = por %p504_p4, %p503_p3 }
  0x15   : > { %5060 = sst [smem:[#allocation9_spill]] %s3977_s30  ;;  %p2973_p7 = scmp.ge.s32.totalorder %s3821_s27, 1 }
  0x16   : > { %s5062_s22 = scalar_select %p3983_p6, 1, 0 }
  0x17   : > { %p590_p8 = scmp.lt.s32.totalorder %s3821_s27, 3 }
  0x18   : > { %5063 = sst [smem:[#allocation10_spill]] %s5062_s22 }
  0x19   : > { %p591_p9 = pnand %p2973_p7, %p590_p8 }
  0x1a   : > { %s5064_s24 = sld [smem:[#allocation12_spill]] (!%p591_p9)  ;;  %p649_p10 = scmp.lt.s32.totalorder (!%p591_p9), %s3962_s3, 1  ;;  %vm998_vm2 = vcmask (!%p591_p9), 523264   ;;  %vm3824_vm3 = vmmov (!%p591_p9), 0   ;;  %vm1142_vm4 = vcmask (!%p591_p9), 261120   ;;  %vm1219_vm6 = vcmask (!%p591_p9), 64512  }
  0x1b   : > { %594 = sbr.rel (%p591_p9) target bundleno = 5442 (0x1542), region = 104  ;;  %s5065_s23 = sld [smem:[#allocation11_spill]] (!%p591_p9) }
  0x1c   : > { %s5066_s28 = sld [smem:[#allocation13_spill]] (!%p591_p9)  ;;  %s5067_s2 = sld [smem:[#allocation14_spill]] (!%p591_p9) }
  0x1d   : > { %s5068_s27 = sld [smem:[#allocation15_spill]] (!%p591_p9)  ;;  %s5069_s29 = sld [smem:[#allocation16_spill]] (!%p591_p9) }
  0x1e   : > { %s3825_s20 = smov (!%p591_p9), 32   ;;  %s3826_s0 = smov (!%p591_p9), 64  }
  0x1f   : > { %s5070_s4 = smov (!%p591_p9), 96   ;;  %s647_s21 = sand.u32 (!%p591_p9), 1, %s3813_s25  }
  0x20   : > { %v676_v0 = vld [vmem:[%s5064_s24 + $0x80] sm:$0xff] (!%p591_p9)  ;;  %v677_v1 = vld [vmem:[%s5064_s24 + $0x88] sm:$0xff] (!%p591_p9)  ;;  %v678_v11 = vld [vmem:[%s5064_s24 + $0x90] sm:$0xff] (!%p591_p9) }
  0x21   : > { %v660_v2 = vld [vmem:[%s5064_s24] sm:$0xff] (!%p591_p9)  ;;  %v3418_v3 = vpack.c.bf16 (!%p591_p9), %v677_v1, %v676_v0  ;;  %v661_v4 = vld [vmem:[%s5064_s24 + $0x8] sm:$0xff] (!%p591_p9)  ;;  %v679_v13 = vld [vmem:[%s5064_s24 + $0x98] sm:$0xff] (!%p591_p9) }
  0x22   : > { %v708_v5 = vld [vmem:[%s5064_s24 + $0x180] sm:$0xff]  ;;  %v709_v6 = vld [vmem:[%s5064_s24 + $0x188] sm:$0xff]  ;;  %v3420_v7 = vpack.c.bf16 %v661_v4, %v660_v2  ;;  %v662_v14 = vld [vmem:[%s5064_s24 + $0x10] sm:$0xff]  ;;  %v3422_v16 = vpack.c.bf16 %v679_v13, %v678_v11  ;;  %s4083_s26 = scalar_select %p649_p10, %s3962_s3, 1 }
  0x23   : > { %v3450_v8 = vpack.c.bf16 %v709_v6, %v708_v5  ;;  %v692_v9 = vld [vmem:[%s5064_s24 + $0x100] sm:$0xff]  ;;  %v693_v10 = vld [vmem:[%s5064_s24 + $0x108] sm:$0xff]  ;;  %3419 = vmatprep.subr.bf16.mxu0 %v3418_v3  ;;  %v663_v15 = vld [vmem:[%s5064_s24 + $0x18] sm:$0xff] }
  0x24   : > { %v3452_v12 = vpack.c.bf16 %v693_v10, %v692_v9  ;;  %3421 = vmatpush3.bf16.msra.mxu0 %v3420_v7  ;;  %v3424_v17 = vpack.c.bf16 %v663_v15, %v662_v14  ;;  %v710_v18 = vld [vmem:[%s5064_s24 + $0x190] sm:$0xff]  ;;  %v711_v19 = vld [vmem:[%s5064_s24 + $0x198] sm:$0xff]  ;;  %v680_v23 = vld [vmem:[%s5064_s24 + $0xa0] sm:$0xff]  ;;  %s3678_s30 = smul.u32 48, %s4083_s26  ;;  %s2903_s26 = scalar_lea.sflag [#allocation3], %s647_s21 }
  0x25   : > { %3451 = vmatprep.subr.bf16.mxu1 %v3450_v8  ;;  %v694_v20 = vld [vmem:[%s5064_s24 + $0x110] sm:$0xff]  ;;  %v3454_v21 = vpack.c.bf16 %v711_v19, %v710_v18  ;;  %v695_v22 = vld [vmem:[%s5064_s24 + $0x118] sm:$0xff]  ;;  %v681_v24 = vld [vmem:[%s5064_s24 + $0xa8] sm:$0xff]  ;;  %3423 = vmatprep.subr.bf16.mxu0 %v3422_v16 }
  0x26   : > { %3453 = vmatpush3.bf16.msra.mxu1 %v3452_v12  ;;  %v3456_v25 = vpack.c.bf16 %v695_v22, %v694_v20  ;;  %v3426_v26 = vpack.c.bf16 %v681_v24, %v680_v23  ;;  %v664_v27 = vld [vmem:[%s5064_s24 + $0x20] sm:$0xff]  ;;  %v665_v28 = vld [vmem:[%s5064_s24 + $0x28] sm:$0xff]  ;;  %v682_v35 = vld [vmem:[%s5064_s24 + $0xb0] sm:$0xff]  ;;  %s4140_s1 = scalar_lea.vmem %s5065_s23, %s3678_s30  ;;  %s5046_s23 = smov 96  }
  0x27   : > { %v712_v29 = vld [vmem:[%s5064_s24 + $0x1a0] sm:$0xff]  ;;  %3455 = vmatprep.subr.bf16.mxu1 %v3454_v21  ;;  %v713_v30 = vld [vmem:[%s5064_s24 + $0x1a8] sm:$0xff]  ;;  %v3428_v33 = vpack.c.bf16 %v665_v28, %v664_v27  ;;  %v683_v36 = vld [vmem:[%s5064_s24 + $0xb8] sm:$0xff] }
  0x28   : > { %v696_v31 = vld [vmem:[%s5064_s24 + $0x120] sm:$0xff]  ;;  %v697_v32 = vld [vmem:[%s5064_s24 + $0x128] sm:$0xff]  ;;  %3425 = vmatpush3.bf16.msra.mxu0 %v3424_v17  ;;  %v3458_v34 = vpack.c.bf16 %v713_v30, %v712_v29  ;;  %v666_v37 = vld [vmem:[%s5064_s24 + $0x30] sm:$0xff]  ;;  %v3430_v39 = vpack.c.bf16 %v683_v36, %v682_v35 }
  0x29   : > { %3427 = vmatprep.subr.bf16.mxu0 %v3426_v26  ;;  %v3460_v38 = vpack.c.bf16 %v697_v32, %v696_v31  ;;  %v667_v40 = vld [vmem:[%s5064_s24 + $0x38] sm:$0xff]  ;;  %v714_v41 = vld [vmem:[%s5064_s24 + $0x1b0] sm:$0xff]  ;;  %v684_v46 = vld [vmem:[%s5064_s24 + $0xc0] sm:$0xff] }
  0x2a   : > { %3457 = vmatpush3.bf16.msra.mxu1 %v3456_v25  ;;  %v715_v42 = vld [vmem:[%s5064_s24 + $0x1b8] sm:$0xff]  ;;  %v698_v44 = vld [vmem:[%s5064_s24 + $0x130] sm:$0xff]  ;;  %v685_v47 = vld [vmem:[%s5064_s24 + $0xc8] sm:$0xff]  ;;  %v3432_v48 = vpack.c.bf16 %v667_v40, %v666_v37 }
  0x2b   : > { %3459 = vmatprep.subr.bf16.mxu1 %v3458_v34  ;;  %v3462_v43 = vpack.c.bf16 %v715_v42, %v714_v41  ;;  %v699_v45 = vld [vmem:[%s5064_s24 + $0x138] sm:$0xff]  ;;  %v716_v49 = vld [vmem:[%s5064_s24 + $0x1c0] sm:$0xff]  ;;  %v717_v50 = vld [vmem:[%s5064_s24 + $0x1c8] sm:$0xff]  ;;  %v3434_v52 = vpack.c.bf16 %v685_v47, %v684_v46 }
  0x2c   : > { %3429 = vmatpush3.bf16.msra.mxu0 %v3428_v33  ;;  %v3464_v51 = vpack.c.bf16 %v699_v45, %v698_v44  ;;  %v668_v53 = vld [vmem:[%s5064_s24 + $0x40] sm:$0xff]  ;;  %v669_v54 = vld [vmem:[%s5064_s24 + $0x48] sm:$0xff]  ;;  %v3466_v56 = vpack.c.bf16 %v717_v50, %v716_v49  ;;  %v686_v58 = vld [vmem:[%s5064_s24 + $0xd0] sm:$0xff] }
  0x2d   : > { %3431 = vmatprep.subr.bf16.mxu0 %v3430_v39  ;;  %v700_v55 = vld [vmem:[%s5064_s24 + $0x140] sm:$0xff]  ;;  %v701_v57 = vld [vmem:[%s5064_s24 + $0x148] sm:$0xff]  ;;  %v687_v59 = vld [vmem:[%s5064_s24 + $0xd8] sm:$0xff]  ;;  %v3436_v62 = vpack.c.bf16 %v669_v54, %v668_v53 }
  0x2e   : > { %3461 = vmatpush3.bf16.msra.mxu1 %v3460_v38  ;;  %v718_v60 = vld [vmem:[%s5064_s24 + $0x1d0] sm:$0xff]  ;;  %v719_v61 = vld [vmem:[%s5064_s24 + $0x1d8] sm:$0xff]  ;;  %v3468_v63 = vpack.c.bf16 %v701_v57, %v700_v55  ;;  %v3438_v0 = vpack.c.bf16 %v687_v59, %v686_v58  ;;  %v688_v6 = vld [vmem:[%s5064_s24 + $0xe0] sm:$0xff] }
  0x2f   : > { %3463 = vmatprep.subr.bf16.mxu1 %v3462_v43  ;;  %v670_v1 = vld [vmem:[%s5064_s24 + $0x50] sm:$0xff]  ;;  %v671_v2 = vld [vmem:[%s5064_s24 + $0x58] sm:$0xff]  ;;  %v3470_v4 = vpack.c.bf16 %v719_v61, %v718_v60  ;;  %v689_v7 = vld [vmem:[%s5064_s24 + $0xe8] sm:$0xff] }
  0x30   : > { %3433 = vmatpush3.bf16.msra.mxu0 %v3432_v48  ;;  %v702_v3 = vld [vmem:[%s5064_s24 + $0x150] sm:$0xff]  ;;  %v703_v5 = vld [vmem:[%s5064_s24 + $0x158] sm:$0xff]  ;;  %v720_v8 = vld [vmem:[%s5064_s24 + $0x1e0] sm:$0xff]  ;;  %v3440_v10 = vpack.c.bf16 %v671_v2, %v670_v1  ;;  %v3442_v14 = vpack.c.bf16 %v689_v7, %v688_v6 }
  0x31   : > { %3435 = vmatprep.subr.bf16.mxu0 %v3434_v52  ;;  %v721_v9 = vld [vmem:[%s5064_s24 + $0x1e8] sm:$0xff]  ;;  %v672_v11 = vld [vmem:[%s5064_s24 + $0x60] sm:$0xff]  ;;  %v3472_v13 = vpack.c.bf16 %v703_v5, %v702_v3  ;;  %v690_v19 = vld [vmem:[%s5064_s24 + $0xf0] sm:$0xff] }
  0x32   : > { %3465 = vmatpush3.bf16.msra.mxu1 %v3464_v51  ;;  %v655_v12 = vld [vmem:[%s4140_s1 + $0x8] sm:$0xff]  ;;  %v704_v16 = vld [vmem:[%s5064_s24 + $0x160] sm:$0xff]  ;;  %v3474_v18 = vpack.c.bf16 %v721_v9, %v720_v8  ;;  %v691_v20 = vld [vmem:[%s5064_s24 + $0xf8] sm:$0xff] }
  0x33   : > { %3467 = vmatprep.subr.bf16.mxu1 %v3466_v56  ;;  %v673_v15 = vld [vmem:[%s5064_s24 + $0x68] sm:$0xff]  ;;  %827 = vmatprep.mubr.f32.mxu0 %v655_v12  ;;  %v657_v21 = vld [vmem:[%s4140_s1 + $0x18] sm:$0xff]  ;;  %v722_v22 = vld [vmem:[%s5064_s24 + $0x1f0] sm:$0xff]  ;;  %v3446_v26 = vpack.c.bf16 %v691_v20, %v690_v19 }
  0x34   : > { %3437 = vmatpush3.bf16.msra.mxu0 %v3436_v62  ;;  %v705_v17 = vld [vmem:[%s5064_s24 + $0x168] sm:$0xff]  ;;  %v723_v23 = vld [vmem:[%s5064_s24 + $0x1f8] sm:$0xff]  ;;  %897 = vmatprep.mubr.f32.mxu1 %v657_v21  ;;  %v3444_v24 = vpack.c.bf16 %v673_v15, %v672_v11  ;;  %v674_v27 = vld [vmem:[%s5064_s24 + $0x70] sm:$0xff] }
  0x35   : > { %3439 = vmatprep.subr.bf16.mxu0 %v3438_v0  ;;  %v3476_v25 = vpack.c.bf16 %v705_v17, %v704_v16  ;;  %v675_v28 = vld [vmem:[%s5064_s24 + $0x78] sm:$0xff]  ;;  %v706_v29 = vld [vmem:[%s5064_s24 + $0x170] sm:$0xff]  ;;  %v3478_v30 = vpack.c.bf16 %v723_v23, %v722_v22  ;;  %v740_v32 = vld [vmem:[%s5064_s24 + $0x280] sm:$0xff] }
  0x36   : > { %3469 = vmatpush3.bf16.msra.mxu1 %v3468_v63  ;;  %v707_v31 = vld [vmem:[%s5064_s24 + $0x178] sm:$0xff]  ;;  %v741_v33 = vld [vmem:[%s5064_s24 + $0x288] sm:$0xff]  ;;  %v3448_v34 = vpack.c.bf16 %v675_v28, %v674_v27  ;;  %v724_v37 = vld [vmem:[%s5064_s24 + $0x200] sm:$0xff] }
  0x37   : > { %3471 = vmatprep.subr.bf16.mxu1 %v3470_v4  ;;  %v3480_v35 = vpack.c.bf16 %v707_v31, %v706_v29  ;;  %v3482_v36 = vpack.c.bf16 %v741_v33, %v740_v32  ;;  %v725_v38 = vld [vmem:[%s5064_s24 + $0x208] sm:$0xff]  ;;  %v742_v39 = vld [vmem:[%s5064_s24 + $0x290] sm:$0xff]  ;;  %v743_v40 = vld [vmem:[%s5064_s24 + $0x298] sm:$0xff]  ;;  %v973_v31 = vlaneseq }
  0x38   : > { %3441 = vmatpush3.bf16.msra.mxu0 %v3440_v10  ;;  %v654_v41 = vld [vmem:[%s4140_s1] sm:$0xff]  ;;  %v3484_v42 = vpack.c.bf16 %v725_v38, %v724_v37  ;;  %v656_v43 = vld [vmem:[%s4140_s1 + $0x10] sm:$0xff]  ;;  %v3486_v44 = vpack.c.bf16 %v743_v40, %v742_v39  ;;  %v727_v46 = vld [vmem:[%s5064_s24 + $0x218] sm:$0xff] }
  0x39   : > { %3443 = vmatprep.subr.bf16.mxu0 %v3442_v14  ;;  %v726_v45 = vld [vmem:[%s5064_s24 + $0x210] sm:$0xff]  ;;  %v744_v47 = vld [vmem:[%s5064_s24 + $0x2a0] sm:$0xff]  ;;  %v745_v48 = vld [vmem:[%s5064_s24 + $0x2a8] sm:$0xff]  ;;  %v4299_v32 = vshrl.u32 %v973_v31, 7 }
  0x3a   : > { %3473 = vmatpush3.bf16.msra.mxu1 %v3472_v13  ;;  %v659_v49 = vld [vmem:[%s4140_s1 + $0x28] sm:$0xff]  ;;  %v3488_v50 = vpack.c.bf16 %v727_v46, %v726_v45  ;;  %v3490_v51 = vpack.c.bf16 %v745_v48, %v744_v47  ;;  %v728_v52 = vld [vmem:[%s5064_s24 + $0x220] sm:$0xff]  ;;  %v746_v54 = vld [vmem:[%s5064_s24 + $0x2b0] sm:$0xff] }
  0x3b   : > { %3475 = vmatprep.subr.bf16.mxu1 %v3474_v18  ;;  %v729_v53 = vld [vmem:[%s5064_s24 + $0x228] sm:$0xff]  ;;  %v747_v55 = vld [vmem:[%s5064_s24 + $0x2b8] sm:$0xff]  ;;  %v730_v58 = vld [vmem:[%s5064_s24 + $0x230] sm:$0xff]  ;;  %vm977_vm0 = vcmp.lt.s32.totalorder %v4299_v32, 5  ;;  %vm975_vm1 = vcmp.eq.s32.totalorder %v4299_v32, 0 }
  0x3c   : > { %3445 = vmatpush3.bf16.msra.mxu0 %v3444_v24  ;;  %v3492_v56 = vpack.c.bf16 %v729_v53, %v728_v52  ;;  %v3494_v57 = vpack.c.bf16 %v747_v55, %v746_v54  ;;  %v731_v59 = vld [vmem:[%s5064_s24 + $0x238] sm:$0xff]  ;;  %v748_v60 = vld [vmem:[%s5064_s24 + $0x2c0] sm:$0xff]  ;;  %v749_v61 = vld [vmem:[%s5064_s24 + $0x2c8] sm:$0xff] }
  0x3d   : > { %3447 = vmatprep.subr.bf16.mxu0 %v3446_v26  ;;  %v3496_v62 = vpack.c.bf16 %v731_v59, %v730_v58  ;;  %v3498_v63 = vpack.c.bf16 %v749_v61, %v748_v60  ;;  %v732_v0 = vld [vmem:[%s5064_s24 + $0x240] sm:$0xff]  ;;  %v733_v1 = vld [vmem:[%s5064_s24 + $0x248] sm:$0xff]  ;;  %v750_v2 = vld [vmem:[%s5064_s24 + $0x2d0] sm:$0xff] }
  0x3e   : > { %3477 = vmatpush3.bf16.msra.mxu1 %v3476_v25  ;;  %v751_v3 = vld [vmem:[%s5064_s24 + $0x2d8] sm:$0xff]  ;;  %v3500_v4 = vpack.c.bf16 %v733_v1, %v732_v0  ;;  %v734_v6 = vld [vmem:[%s5064_s24 + $0x250] sm:$0xff]  ;;  %v752_v8 = vld [vmem:[%s5064_s24 + $0x2e0] sm:$0xff] }
  0x3f   : > { %3479 = vmatprep.subr.bf16.mxu1 %v3478_v30  ;;  %v3502_v5 = vpack.c.bf16 %v751_v3, %v750_v2  ;;  %v735_v7 = vld [vmem:[%s5064_s24 + $0x258] sm:$0xff]  ;;  %v753_v9 = vld [vmem:[%s5064_s24 + $0x2e8] sm:$0xff]  ;;  %v736_v12 = vld [vmem:[%s5064_s24 + $0x260] sm:$0xff] }
  0x40   : > { %3449 = vmatpush3.bf16.msra.mxu0 %v3448_v34  ;;  %v3504_v10 = vpack.c.bf16 %v735_v7, %v734_v6  ;;  %v3506_v11 = vpack.c.bf16 %v753_v9, %v752_v8  ;;  %v737_v13 = vld [vmem:[%s5064_s24 + $0x268] sm:$0xff]  ;;  %v754_v14 = vld [vmem:[%s5064_s24 + $0x2f0] sm:$0xff]  ;;  %v755_v15 = vld [vmem:[%s5064_s24 + $0x2f8] sm:$0xff] }
  0x41   : > { %3483 = vmatprep.subr.bf16.mxu0 %v3482_v36  ;;  %v3508_v16 = vpack.c.bf16 %v737_v13, %v736_v12  ;;  %v3510_v17 = vpack.c.bf16 %v755_v15, %v754_v14  ;;  %v738_v18 = vld [vmem:[%s5064_s24 + $0x270] sm:$0xff]  ;;  %v739_v19 = vld [vmem:[%s5064_s24 + $0x278] sm:$0xff]  ;;  %v658_v21 = vld [vmem:[%s4140_s1 + $0x20] sm:$0xff]  ;;  %s648_s1 = scalar_lea.vmem [#allocation2], %s647_s21 }
  0x42   : > { %3481 = vmatpush3.bf16.msra.mxu1 %v3480_v35  ;;  %v3512_v20 = vpack.c.bf16 %v739_v19, %v738_v18  ;;  %v2975_v23 = vld [vmem:[%s5066_s28] ss:$0 sm:$0xff]  ;;  %v1030_v45 = vld [vmem:[%s5022_s7 + $0x8] sm:$0xff]  ;;  %v1032_v46 = vld [vmem:[%s5022_s7 + $0x18] sm:$0xff]  ;;  %s3092_s28 = sshll.u32 %s3962_s3, 4  ;;  %s3830_s3 = smov [#allocation2]  }
  0x43   : > { %828 = vmatmul.mubr.f32.vlgmr.msra.gmra.mrb[0].mxu0 %v654_v41  ;;  %v2976_v37 = vld [vmem:[%s5067_s2] ss:$0 sm:$0xff]  ;;  %v3514_v47 = vpack.c.bf16 %v1032_v46, %v1030_v45  ;;  %v1036_v52 = vld [vmem:[%s5022_s7 + $0x38] sm:$0xff]  ;;  %v1035_v55 = vld [vmem:[%s5022_s7 + $0x30] sm:$0xff]  ;;  %s2915_s2 = sshll.u32 %s648_s1, 4  ;;  %s4975_s2 = int_to_ptr.vmem [resolvable:$true] %s2915_s2 }
  0x44   : > { %3485 = vmatpush3.bf16.msra.mxu0 %v3484_v42  ;;  %967 = vmatprep.mubr.f32.mxu0 %v659_v49  ;;  %v990_v38 = vld [vmem:[%s5068_s27] sm:$0xff]  ;;  %v1031_v49 = vld [vmem:[%s5022_s7 + $0x10] sm:$0xff]  ;;  %v1040_v58 = vld [vmem:[%s5022_s7 + $0x58] sm:$0xff] }
  0x45   : > { %898 = vmatmul.mubr.f32.vlgmr.msra.gmra.mrb[0].mxu1 %v656_v43  ;;  %3487 = vmatprep.subr.bf16.mxu0 %v3486_v44  ;;  %v1029_v48 = vld [vmem:[%s5022_s7] sm:$0xff]  ;;  %v1039_v61 = vld [vmem:[%s5022_s7 + $0x50] sm:$0xff]  ;;  %v1044_v0 = vld [vmem:[%s5022_s7 + $0x78] sm:$0xff] }
  0x46   : > { %3515 = vmatprep.subr.bf16.mxu1 %v3514_v47  ;;  %v1033_v54 = vld [vmem:[%s5022_s7 + $0x20] sm:$0xff]  ;;  %v1043_v3 = vld [vmem:[%s5022_s7 + $0x70] sm:$0xff] }
  0x47   : > { %v1037_v60 = vld [vmem:[%s5022_s7 + $0x40] sm:$0xff] }
  0x48   : > { %3489 = vmatpush3.bf16.msra.mxu0 %v3488_v50  ;;  %v3516_v50 = vpack.c.bf16 %v1031_v49, %v1029_v48  ;;  %v1041_v2 = vld [vmem:[%s5022_s7 + $0x60] sm:$0xff] }
  0x49   : > { %3491 = vmatprep.subr.bf16.mxu0 %v3490_v51  ;;  %v1034_v51 = vld [vmem:[%s5022_s7 + $0x28] sm:$0xff]  ;;  %v2977_v15 = vld [vmem:[%s5069_s29] ss:$0 sm:$0xff] }
  0x4a   : > { %3517 = vmatpush1.bf16.msra.mxu1 %v3516_v50  ;;  %v3518_v53 = vpack.c.bf16 %v1036_v52, %v1034_v51 }
  0x4c   : > { %3493 = vmatpush3.bf16.msra.mxu0 %v3492_v56  ;;  %v3520_v56 = vpack.c.bf16 %v1035_v55, %v1033_v54  ;;  %3519 = vmatprep.subr.bf16.mxu1 %v3518_v53 }
  0x4d   : > { %3495 = vmatprep.subr.bf16.mxu0 %v3494_v57  ;;  %v1038_v57 = vld [vmem:[%s5022_s7 + $0x48] sm:$0xff] }
  0x4e   : > { %3521 = vmatpush1.bf16.msra.mxu1 %v3520_v56  ;;  %v3522_v59 = vpack.c.bf16 %v1040_v58, %v1038_v57 }
  0x50   : > { %3497 = vmatpush3.bf16.msra.mxu0 %v3496_v62  ;;  %v3524_v62 = vpack.c.bf16 %v1039_v61, %v1037_v60  ;;  %3523 = vmatprep.subr.bf16.mxu1 %v3522_v59  ;;  %v3829_v61 = vmov 0.0|0.0  }
  0x51   : > { %3499 = vmatprep.subr.bf16.mxu0 %v3498_v63  ;;  %v1042_v63 = vld [vmem:[%s5022_s7 + $0x68] sm:$0xff] }
  0x52   : > { %3525 = vmatpush1.bf16.msra.mxu1 %v3524_v62  ;;  %v3526_v1 = vpack.c.bf16 %v1044_v0, %v1042_v63  ;;  %v1135_v62 = vld [vmem:[%s5024_s9 + $0x20] sm:$0xff]  ;;  %v1136_v63 = vld [vmem:[%s5024_s9 + $0x28] sm:$0xff]  ;;  %v1137_v0 = vld [vmem:[%s5024_s9 + $0x30] sm:$0xff] }
  0x54   : > { %3501 = vmatpush3.bf16.msra.mxu0 %v3500_v4  ;;  %v3528_v4 = vpack.c.bf16 %v1043_v3, %v1041_v2  ;;  %3527 = vmatprep.subr.bf16.mxu1 %v3526_v1  ;;  %v3531_v1 = vpack.c.bf16 %v1136_v63, %v1135_v62  ;;  %v1138_v2 = vld [vmem:[%s5024_s9 + $0x38] sm:$0xff] }
  0x55   : > { %3503 = vmatprep.subr.bf16.mxu0 %v3502_v5  ;;  %v3823_v5 = vmov 0.0   ;;  %v3534_v3 = vpack.c.bf16 %v1138_v2, %v1137_v0 }
  0x56   : > { %1124 = vmatprep.mubr.f32.mxu1 %v3823_v5  ;;  %3529 = vmatpush1.bf16.msra.mxu1 %v3528_v4 }
  0x57   : > { %3315 = vmatprep.subr.mxu1 %v3823_v5 }
  0x58   : > { %3505 = vmatpush3.bf16.msra.mxu0 %v3504_v10 }
  0x59   : > { %3507 = vmatprep.subr.bf16.mxu0 %v3506_v11 }
  0x5c   : > { %3509 = vmatpush3.bf16.msra.mxu0 %v3508_v16 }
  0x5d   : > { %3511 = vmatprep.subr.bf16.mxu0 %v3510_v17  ;;  %v2978_v17 = vld [vmem:[%s5021_s6] ss:$0 sm:$0xff] }
  0x60   : > { %3513 = vmatpush3.bf16.msra.mxu0 %v3512_v20  ;;  %v4379_v20 = vsub.s32 0, %v4299_v32 }
  0x61   : > { %3530 = vmatprep.subr.bf16.mxu0 %v3829_v61 }
  0x63   : > { %968 = vmatmul.mubr.f32.vlgmr.msra.gmra.mrb[2].mxu0 %v658_v21  ;;  %v1045_v21 = vld [vmem:[%s5023_s8] sm:$0x3] }
  0x64   : > { %3343 = vmatprep.mubr.msk.f32.mxu0 %vm3824_vm3, %v3823_v5  ;;  %3532 = vmatpush3.bf16.msra.mxu0 %v3531_v1  ;;  %v2989_v1 = vld [vmem:[%s5026_s11] ss:$0 sm:$0xff] }
  0x65   : > { %3533 = vmatprep.subr.bf16.mxu0 %v3829_v61 }
  0x68   : > { %3535 = vmatpush3.bf16.msra.mxu0 %v3534_v3  ;;  %v2990_v3 = vld [vmem:[%s5027_s12] ss:$0 sm:$0xff] }
 0x116   : > { %v3127_v22 = vpop.f32.mrb[0].mxu0 }
 0x117   : > { %v3128_v24 = vpop.f32.mrb[1].mxu0 }
 0x118   : > { %v3162_v25 = vpop.f32.mrb[0].mxu1  ;;  %v3129_v26 = vadd.f32 %v3128_v24, %v3127_v22  ;;  %v1050_v22 = vrot.slane %v1045_v21, %v4379_v20 }
 0x119   : > { %v3163_v27 = vpop.f32.mrb[1].mxu1 }
 0x11a   : > { %v3164_v28 = vadd.f32 %v3163_v27, %v3162_v25  ;;  %v830_v29 = vadd.f32 %v3129_v26, %v2975_v23  ;;  %v4388_v26 = vsub.s32 1, %v4299_v32 }
 0x11c   : > { %v900_v30 = vadd.f32 %v3164_v28, %v830_v29  ;;  %v1054_v27 = vrot.slane %v1045_v21, %v4388_v26 }
 0x136   : > { %v3197_v33 = vpop.f32.mrb[2].mxu0 }
 0x137   : > { %v3198_v34 = vpop.f32.mrb[3].mxu0 }
 0x138   : > { %v3199_v35 = vadd.f32 %v3198_v34, %v3197_v33  ;;  %v3827_v33 = vmov -1e+30  }
 0x13a   : > { %v970_v36 = vadd.f32 %v3199_v35, %v900_v30  ;;  %v993_v30 = vand.u32 127, %v973_v31 }
 0x13c   : > { %v980_v39 = vsel %vm977_vm0, %v970_v36, 0.0  ;;  %vm994_vm5 = vcmp.lt.s32.totalorder %v993_v30, 5  ;;  %v1659_v30 = vld [vmem:[%s5028_s13 + $0x8] sm:$0xff] }
 0x13d   : > { %v989_v40 = vsel %vm975_vm1, %v2976_v37, %v980_v39  ;;  %v4398_v34 = vsel %vm994_vm5, 0.0, %v3827_v33  ;;  %v1658_v33 = vld [vmem:[%s5028_s13] sm:$0xff] }
 0x13e   : > { %v4309_v41 = vadd.f32 %v990_v38, %v989_v40 }
 0x140   : > { %v999_v42 = vsel %vm998_vm2, %v4309_v41, 0.0  ;;  %v1004_v43 = vmul.f32 %v4309_v41, %v4309_v41 }
 0x141   : > { %1000 = vadd.xlane.f32.xlu0 %v999_v42 }
 0x142   : > { %v1005_v44 = vsel %vm998_vm2, %v1004_v43, 0.0 }
 0x145   : > { %1006 = vadd.xlane.f32.xlu0 %v1005_v44 }
 0x1ce   : > { %v1001_v6 = vpop.xlane.xlu0 %1000 }
 0x1cf   : > { %v1003_v7 = vmul.f32 0.015625, %v1001_v6 }
 0x1d1   : > { %v1009_v9 = vmul.f32 %v1003_v7, %v1003_v7  ;;  %v1011_v13 = vsub.f32 %v4309_v41, %v1003_v7  ;;  %v1131_v7 = vld [vmem:[%s5024_s9] sm:$0xff] }
 0x1d2   : > { %v1007_v8 = vpop.xlane.xlu0 %1006 }
 0x1d3   : > { %v1008_v10 = vmul.f32 0.015625, %v1007_v8  ;;  %v1132_v8 = vld [vmem:[%s5024_s9 + $0x8] sm:$0xff] }
 0x1d5   : > { %v1010_v11 = vsub.f32 %v1008_v10, %v1009_v9  ;;  %v3537_v10 = vpack.c.bf16 %v1132_v8, %v1131_v7  ;;  %v1794_v7 = vld [vmem:[%s5030_s15 + $0x80] sm:$0xff]  ;;  %v1795_v8 = vld [vmem:[%s5030_s15 + $0x88] sm:$0xff] }
 0x1d7   : > { %v1012_v12 = vadd.f32 1e-06, %v1010_v11 }
 0x1d9   : > { %3725 = vrsqrt.f32 %v1012_v12  ;;  %v1133_v12 = vld [vmem:[%s5024_s9 + $0x10] sm:$0xff] }
 0x1e3   : > { %v3726_v14 = vpop.eup %3725 }
 0x1e4   : > { %v1014_v16 = vmul.f32 %v3726_v14, %v1011_v13  ;;  %v1134_v13 = vld [vmem:[%s5024_s9 + $0x18] sm:$0xff] }
 0x1e5   : > { %v3540_v14 = vpack.c.bf16 %v1134_v13, %v1133_v12  ;;  %v1796_v13 = vld [vmem:[%s5030_s15 + $0x90] sm:$0xff] }
 0x1e6   : > { %v1021_v18 = vmul.f32 %v2977_v15, %v1014_v16 }
 0x1e8   : > { %v1028_v19 = vadd.f32 %v2978_v17, %v1021_v18 }
 0x1ea   : > { %2979 = vmatmul.mubr.msk.f32.vlgmr.msra.gmra.mrb[2].mxu1 %vm998_vm2, %v1028_v19 }
 0x1eb   : > { %3317 = vmatprep.mubr.msk.f32.mxu1 %vm3824_vm3, %v3823_v5 }
 0x2bd   : > { %v1126_v23 = vpop.f32.mrb[2].mxu1 }
 0x2be   : > { %v1127_v24 = vadd.f32 %v1126_v23, %v1050_v22  ;;  %v1128_v25 = vpop.f32.mrb[3].mxu1  ;;  %v2988_v23 = vld [vmem:[%s5025_s10] ss:$0 sm:$0xff] }
 0x2bf   : > { %v1129_v29 = vadd.f32 %v1128_v25, %v1054_v27 }
 0x2c0   : > { %1306 = vrot.lane.b32.xlu0 %v1127_v24, %s3825_s20  ;;  %1140 = vrot.lane.b32.xlu1 %v1127_v24, %s3826_s0 }
 0x332   : > { %v1141_v28 = vpop.permute.xlu1 %1140  ;;  %v1307_v44 = vpop.permute.xlu0 %1306 }
 0x333   : > { %3316 = vmatpush3.xpose.msk.msra.mxu1 %vm1142_vm4, %v1141_v28 }
 0x334   : > { %3320 = vmatprep.subr.mxu1 %v3823_v5 }
 0x336   : > { %3318 = vmatmul.mubr.msk.f32.vlgmr.msra.gmra.mrb[4].mxu1 %vm1142_vm4, %v1127_v24 }
 0x337   : > { %3321 = vmatpush3.msra.mxu1 %v1129_v29  ;;  %3322 = vmatprep.mubr.msk.f32.mxu1 %vm3824_vm3, %v3823_v5 }
 0x338   : > { %3325 = vmatprep.subr.mxu1 %v3823_v5 }
 0x409   : > { %v1213_v32 = vpop.f32.mrb[4].mxu1 }
 0x40a   : > { %v1217_v35 = vmul.f32 0.17677669, %v1213_v32  ;;  %v3319_v36 = vpop.f32.mrb[5].mxu1 }
 0x40c   : > { %v1218_v37 = vadd.f32 %v1217_v35, %v4398_v34  ;;  %v1660_v35 = vld [vmem:[%s5028_s13 + $0x10] sm:$0xff] }
 0x40d   : > { %v3544_v36 = vpack.c.bf16 %v1660_v35, %v1658_v33  ;;  %v1802_v35 = vld [vmem:[%s5030_s15 + $0xc0] sm:$0xff] }
 0x40e   : > { %v1220_v38 = vsel %vm1219_vm6, %v1218_v37, -inf }
 0x40f   : > { %1221 = vmax.xlane.f32.xlu1 %v1220_v38  ;;  %v1665_v38 = vld [vmem:[%s5028_s13 + $0x38] sm:$0xff] }
 0x49c   : > { %v1222_v39 = vpop.xlane.xlu1 %1221 }
 0x49d   : > { %v1223_v40 = vsub.f32 %v1218_v37, %v1222_v39  ;;  %v1663_v37 = vld [vmem:[%s5028_s13 + $0x28] sm:$0xff] }
 0x49e   : > { %v3546_v39 = vpack.c.bf16 %v1665_v38, %v1663_v37  ;;  %v1786_v37 = vld [vmem:[%s5030_s15 + $0x40] sm:$0xff] }
 0x49f   : > { %v1224_v42 = vmul.f32 1.442695, %v1223_v40  ;;  %v1662_v40 = vld [vmem:[%s5028_s13 + $0x20] sm:$0xff] }
 0x4a1   : > { %3727 = vpow2.f32 %v1224_v42  ;;  %v1664_v42 = vld [vmem:[%s5028_s13 + $0x30] sm:$0xff] }
 0x4ab   : > { %v3728_v43 = vpop.eup %3727 }
 0x4ac   : > { %v1226_v31 = vsel %vm1219_vm6, %v3728_v43, 0.0 }
 0x4ad   : > { %1227 = vadd.xlane.f32.xlu0 %v1226_v31  ;;  %v1667_v31 = vld [vmem:[%s5028_s13 + $0x48] sm:$0xff] }
 0x4c3   : > { %1304 = vrot.lane.b32.xlu0 %v1127_v24, %s5046_s23 }
 0x53a   : > { %v1228_v45 = vpop.xlane.xlu0 %1227 }
 0x53b   : > { %3729 = vrcp.f32 %v1228_v45 }
 0x53e   : > { %v1305_v48 = vpop.permute.xlu0 %1304 }
 0x545   : > { %v3730_v46 = vpop.eup %3729 }
 0x546   : > { %v1230_v47 = vmul.f32 %v3730_v46, %v3728_v43  ;;  %v3548_v43 = vpack.c.bf16 %v1664_v42, %v1662_v40  ;;  %v1666_v46 = vld [vmem:[%s5028_s13 + $0x40] sm:$0xff]  ;;  %v1804_v40 = vld [vmem:[%s5030_s15 + $0xd0] sm:$0xff]  ;;  %v1805_v42 = vld [vmem:[%s5030_s15 + $0xd8] sm:$0xff] }
 0x548   : > { %3323 = vmatmul.mubr.msk.f32.vlgmr.msra.gmra.mrb[6].mxu1 %vm1219_vm6, %v1230_v47  ;;  %v1668_v47 = vld [vmem:[%s5028_s13 + $0x50] sm:$0xff] }
 0x549   : > { %3326 = vmatpush3.xpose.msk.msra.mxu1 %vm1142_vm4, %v1307_v44  ;;  %3327 = vmatprep.mubr.msk.f32.mxu1 %vm3824_vm3, %v3823_v5  ;;  %v1669_v44 = vld [vmem:[%s5028_s13 + $0x58] sm:$0xff] }
 0x54a   : > { %3330 = vmatprep.subr.mxu1 %v3823_v5  ;;  %v3550_v45 = vpack.c.bf16 %v1669_v44, %v1667_v31  ;;  %v3578_v31 = vpack.c.bf16 %v1805_v42, %v1804_v40  ;;  %v1788_v44 = vld [vmem:[%s5030_s15 + $0x50] sm:$0xff]  ;;  %v3002_v40 = vld [vmem:[%s5022_s7 + $0xa8] sm:$0xff]  ;;  %v3004_v42 = vld [vmem:[%s5022_s7 + $0xb8] sm:$0xff] }
 0x54c   : > { %3328 = vmatmul.mubr.msk.f32.vlgmr.msra.gmra.mrb[8].mxu1 %vm1142_vm4, %v1305_v48  ;;  %v3552_v48 = vpack.c.bf16 %v1668_v47, %v1666_v46  ;;  %v1806_v46 = vld [vmem:[%s5030_s15 + $0xe0] sm:$0xff]  ;;  %v1807_v47 = vld [vmem:[%s5030_s15 + $0xe8] sm:$0xff] }
 0x54d   : > { %3332 = vmatprep.mubr.msk.f32.mxu1 %vm3824_vm3, %v3823_v5 }
 0x61b   : > { %v1300_v49 = vpop.f32.mrb[6].mxu1 }
 0x61c   : > { %v3324_v50 = vpop.f32.mrb[7].mxu1 }
 0x61d   : > { %v1673_v50 = vld [vmem:[%s5028_s13 + $0x78] sm:$0xff] }
 0x61f   : > { %v1378_v51 = vpop.f32.mrb[8].mxu1 }
 0x620   : > { %v1382_v52 = vmul.f32 0.17677669, %v1378_v51  ;;  %v3329_v53 = vpop.f32.mrb[9].mxu1  ;;  %v1670_v51 = vld [vmem:[%s5028_s13 + $0x60] sm:$0xff] }
 0x621   : > { %v1672_v53 = vld [vmem:[%s5028_s13 + $0x70] sm:$0xff] }
 0x622   : > { %v1383_v54 = vadd.f32 %v1382_v52, %v4398_v34 }
 0x624   : > { %v1384_v55 = vsel %vm1219_vm6, %v1383_v54, -inf }
 0x625   : > { %1385 = vmax.xlane.f32.xlu0 %v1384_v55 }
 0x6b2   : > { %v1386_v56 = vpop.xlane.xlu0 %1385 }
 0x6b3   : > { %v1387_v57 = vsub.f32 %v1383_v54, %v1386_v56  ;;  %v3556_v54 = vpack.c.bf16 %v1672_v53, %v1670_v51  ;;  %v1791_v51 = vld [vmem:[%s5030_s15 + $0x68] sm:$0xff]  ;;  %v1809_v53 = vld [vmem:[%s5030_s15 + $0xf8] sm:$0xff] }
 0x6b5   : > { %v1388_v58 = vmul.f32 1.442695, %v1387_v57 }
 0x6b7   : > { %3731 = vpow2.f32 %v1388_v58 }
 0x6c1   : > { %v3732_v59 = vpop.eup %3731 }
 0x6c2   : > { %v1390_v60 = vsel %vm1219_vm6, %v3732_v59, 0.0 }
 0x6c3   : > { %1391 = vadd.xlane.f32.xlu1 %v1390_v60 }
 0x6d4   : > { %1396 = vrot.lane.b32.xlu1 %v1129_v29, %s5046_s23  ;;  %s5072_s23 = sld [smem:[#allocation18_spill]] }
 0x6da   : > { %s4973_s27 = scalar_lea.hbm %s5072_s23, %s3092_s28 }
 0x750   : > { %v1392_v4 = vpop.xlane.xlu1 %1391 }
 0x751   : > { %3733 = vrcp.f32 %v1392_v4 }
 0x754   : > { %v1397_v6 = vpop.permute.xlu1 %1396 }
 0x755   : > { %3331 = vmatpush3.msra.mxu1 %v1397_v6 }
 0x756   : > { %3536 = vmatprep.subr.bf16.mxu1 %v3829_v61 }
 0x75b   : > { %v3734_v9 = vpop.eup %3733 }
 0x75c   : > { %v1394_v11 = vmul.f32 %v3734_v9, %v3732_v59  ;;  %v3558_v9 = vpack.c.bf16 %v1795_v8, %v1794_v7 }
 0x75e   : > { %3333 = vmatmul.mubr.msk.f32.vlgmr.msra.gmra.mrb[10].mxu1 %vm1219_vm6, %v1394_v11  ;;  %v1779_v11 = vld [vmem:[%s5030_s15 + $0x8] sm:$0xff] }
 0x75f   : > { %3538 = vmatpush3.bf16.msra.mxu1 %v3537_v10  ;;  %3354 = vmatprep.mubr.msk.f32.mxu1 %vm3824_vm3, %v3823_v5  ;;  %v1778_v10 = vld [vmem:[%s5030_s15] sm:$0xff] }
 0x760   : > { %3539 = vmatprep.subr.bf16.mxu1 %v3829_v61  ;;  %v3560_v12 = vpack.c.bf16 %v1779_v11, %v1778_v10 }
 0x763   : > { %3541 = vmatpush3.bf16.msra.mxu1 %v3540_v14  ;;  %v1797_v14 = vld [vmem:[%s5030_s15 + $0x98] sm:$0xff] }
 0x764   : > { %3559 = vmatprep.subr.bf16.mxu1 %v3558_v9 }
 0x766   : > { %3355 = vmatmul.mubr.msk.f32.vlgmr.msra.gmra.mrb[12].mxu1 %vm1142_vm4, %v1300_v49  ;;  %v1671_v49 = vld [vmem:[%s5028_s13 + $0x68] sm:$0xff] }
 0x767   : > { %v3554_v52 = vpack.c.bf16 %v1673_v50, %v1671_v49  ;;  %3561 = vmatpush3.bf16.msra.mxu1 %v3560_v12  ;;  %v3582_v49 = vpack.c.bf16 %v1807_v47, %v1806_v46  ;;  %v1790_v50 = vld [vmem:[%s5030_s15 + $0x60] sm:$0xff]  ;;  %v3006_v46 = vld [vmem:[%s5022_s7 + $0xc8] sm:$0xff]  ;;  %v3008_v47 = vld [vmem:[%s5022_s7 + $0xd8] sm:$0xff] }
 0x831   : > { %v1468_v15 = vpop.f32.mrb[10].mxu1 }
 0x832   : > { %v3334_v16 = vpop.f32.mrb[11].mxu1  ;;  %3344 = vmatmul.mubr.msk.f32.vlgmr.msra.gmra.mrb[4].mxu0 %vm1142_vm4, %v1468_v15  ;;  %v3562_v15 = vpack.c.bf16 %v1797_v14, %v1796_v13 }
 0x833   : > { %1753 = vmatprep.mubr.f32.mxu0 %v3823_v5  ;;  %v1780_v16 = vld [vmem:[%s5030_s15 + $0x10] sm:$0xff] }
 0x834   : > { %3563 = vmatprep.subr.bf16.mxu1 %v3562_v15 }
 0x839   : > { %v1614_v17 = vpop.f32.mrb[12].mxu1 }
 0x83a   : > { %v3356_v18 = vpop.f32.mrb[13].mxu1 }
 0x905   : > { %v1541_v19 = vpop.f32.mrb[4].mxu0 }
 0x906   : > { %v1615_v21 = vadd.f32 %v1614_v17, %v1541_v19  ;;  %v3345_v22 = vpop.f32.mrb[5].mxu0  ;;  %v1781_v17 = vld [vmem:[%s5030_s15 + $0x18] sm:$0xff]  ;;  %v1798_v19 = vld [vmem:[%s5030_s15 + $0xa0] sm:$0xff] }
 0x907   : > { %v3564_v18 = vpack.c.bf16 %v1781_v17, %v1780_v16 }
 0x908   : > { %v1618_v24 = vadd.f32 %v1615_v21, %v4309_v41  ;;  %v1661_v41 = vld [vmem:[%s5028_s13 + $0x18] sm:$0xff]  ;;  %v1799_v21 = vld [vmem:[%s5030_s15 + $0xa8] sm:$0xff] }
 0x909   : > { %v3542_v32 = vpack.c.bf16 %v1661_v41, %v1659_v30  ;;  %3565 = vmatpush3.bf16.msra.mxu1 %v3564_v18  ;;  %v3566_v22 = vpack.c.bf16 %v1799_v21, %v1798_v19  ;;  %v1784_v41 = vld [vmem:[%s5030_s15 + $0x30] sm:$0xff] }
 0x90a   : > { %v4454_v25 = vadd.f32 %v2988_v23, %v1618_v24  ;;  %v1782_v23 = vld [vmem:[%s5030_s15 + $0x20] sm:$0xff]  ;;  %v1783_v24 = vld [vmem:[%s5030_s15 + $0x28] sm:$0xff] }
 0x90b   : > { %3543 = vmatprep.subr.bf16.mxu0 %v3542_v32  ;;  %3567 = vmatprep.subr.bf16.mxu1 %v3566_v22  ;;  %v1785_v32 = vld [vmem:[%s5030_s15 + $0x38] sm:$0xff] }
 0x90c   : > { %v1629_v27 = vsel %vm998_vm2, %v4454_v25, 0.0  ;;  %v1633_v28 = vmul.f32 %v4454_v25, %v4454_v25  ;;  %3545 = vmatpush1.bf16.msra.mxu0 %v3544_v36  ;;  %v3572_v33 = vpack.c.bf16 %v1785_v32, %v1784_v41  ;;  %v1803_v36 = vld [vmem:[%s5030_s15 + $0xc8] sm:$0xff] }
 0x90d   : > { %1630 = vadd.xlane.f32.xlu1 %v1629_v27  ;;  %3547 = vmatprep.subr.bf16.mxu0 %v3546_v39  ;;  %v3568_v27 = vpack.c.bf16 %v1783_v24, %v1782_v23  ;;  %v3574_v38 = vpack.c.bf16 %v1803_v36, %v1802_v35  ;;  %v1787_v39 = vld [vmem:[%s5030_s15 + $0x48] sm:$0xff]  ;;  %v2992_v24 = vld [vmem:[%s5031_s16] ss:$0 sm:$0xff]  ;;  %v3000_v36 = vld [vmem:[%s5022_s7 + $0x98] sm:$0xff] }
 0x90e   : > { %v1634_v29 = vsel %vm998_vm2, %v1633_v28, 0.0  ;;  %v1800_v28 = vld [vmem:[%s5030_s15 + $0xb0] sm:$0xff]  ;;  %v2998_v35 = vld [vmem:[%s5022_s7 + $0x88] sm:$0xff] }
 0x90f   : > { %1635 = vadd.xlane.f32.xlu0 %v1634_v29  ;;  %3569 = vmatpush3.bf16.msra.mxu1 %v3568_v27  ;;  %v1801_v29 = vld [vmem:[%s5030_s15 + $0xb8] sm:$0xff] }
 0x910   : > { %3549 = vmatpush1.bf16.msra.mxu0 %v3548_v43  ;;  %v3570_v30 = vpack.c.bf16 %v1801_v29, %v1800_v28  ;;  %v3576_v43 = vpack.c.bf16 %v1787_v39, %v1786_v37  ;;  %v2997_v37 = vld [vmem:[%s5022_s7 + $0x80] sm:$0xff] }
 0x911   : > { %3551 = vmatprep.subr.bf16.mxu0 %v3550_v45  ;;  %v1789_v45 = vld [vmem:[%s5030_s15 + $0x58] sm:$0xff] }
 0x912   : > { %3571 = vmatprep.subr.bf16.mxu1 %v3570_v30 }
 0x913   : > { %3573 = vmatpush3.bf16.msra.mxu1 %v3572_v33 }
 0x914   : > { %3553 = vmatpush1.bf16.msra.mxu0 %v3552_v48  ;;  %3575 = vmatprep.subr.bf16.mxu1 %v3574_v38  ;;  %v3580_v48 = vpack.c.bf16 %v1789_v45, %v1788_v44  ;;  %v2999_v38 = vld [vmem:[%s5022_s7 + $0x90] sm:$0xff] }
 0x915   : > { %3555 = vmatprep.subr.bf16.mxu0 %v3554_v52  ;;  %v1808_v52 = vld [vmem:[%s5030_s15 + $0xf0] sm:$0xff]  ;;  %v3592_v39 = vpack.c.bf16 %v2999_v38, %v2997_v37 }
 0x916   : > { %v3003_v44 = vld [vmem:[%s5022_s7 + $0xb0] sm:$0xff] }
 0x917   : > { %3577 = vmatpush3.bf16.msra.mxu1 %v3576_v43  ;;  %v3594_v43 = vpack.c.bf16 %v3004_v42, %v3002_v40 }
 0x918   : > { %3557 = vmatpush1.bf16.msra.mxu0 %v3556_v54  ;;  %3579 = vmatprep.subr.bf16.mxu1 %v3578_v31  ;;  %v3584_v54 = vpack.c.bf16 %v1791_v51, %v1790_v50  ;;  %v3001_v31 = vld [vmem:[%s5022_s7 + $0xa0] sm:$0xff]  ;;  %v3007_v50 = vld [vmem:[%s5022_s7 + $0xd0] sm:$0xff] }
 0x919   : > { %v3596_v45 = vpack.c.bf16 %v3003_v44, %v3001_v31  ;;  %v3020_v44 = vld [vmem:[%s5024_s9 + $0x68] sm:$0xff] }
 0x91b   : > { %3581 = vmatpush3.bf16.msra.mxu1 %v3580_v48  ;;  %v3598_v48 = vpack.c.bf16 %v3008_v47, %v3006_v46 }
 0x91c   : > { %3583 = vmatprep.subr.bf16.mxu1 %v3582_v49  ;;  %v3005_v49 = vld [vmem:[%s5022_s7 + $0xc0] sm:$0xff] }
 0x91d   : > { %v3600_v51 = vpack.c.bf16 %v3007_v50, %v3005_v49  ;;  %v3015_v50 = vld [vmem:[%s5024_s9 + $0x40] sm:$0xff] }
 0x91f   : > { %3585 = vmatpush3.bf16.msra.mxu1 %v3584_v54  ;;  %v3009_v54 = vld [vmem:[%s5022_s7 + $0xe0] sm:$0xff] }
 0x99a   : > { %v1631_v55 = vpop.xlane.xlu1 %1630 }
 0x99b   : > { %v1632_v56 = vmul.f32 0.015625, %v1631_v55  ;;  %v3586_v55 = vpack.c.bf16 %v1809_v53, %v1808_v52  ;;  %v3010_v52 = vld [vmem:[%s5022_s7 + $0xe8] sm:$0xff]  ;;  %v3012_v53 = vld [vmem:[%s5022_s7 + $0xf8] sm:$0xff] }
 0x99c   : > { %v1636_v57 = vpop.xlane.xlu0 %1635 }
 0x99d   : > { %v1638_v58 = vmul.f32 %v1632_v56, %v1632_v56  ;;  %v1637_v59 = vmul.f32 0.015625, %v1636_v57  ;;  %v1640_v63 = vsub.f32 %v4454_v25, %v1632_v56  ;;  %v1792_v56 = vld [vmem:[%s5030_s15 + $0x70] sm:$0xff]  ;;  %v1793_v57 = vld [vmem:[%s5030_s15 + $0x78] sm:$0xff]  ;;  %3587 = vmatprep.subr.bf16.mxu1 %v3586_v55  ;;  %v3602_v55 = vpack.c.bf16 %v3012_v53, %v3010_v52 }
 0x99f   : > { %v1639_v60 = vsub.f32 %v1637_v59, %v1638_v58  ;;  %v3588_v58 = vpack.c.bf16 %v1793_v57, %v1792_v56  ;;  %v1674_v59 = vld [vmem:[%s5029_s14] sm:$0x3]  ;;  %v3011_v56 = vld [vmem:[%s5022_s7 + $0xf0] sm:$0xff] }
 0x9a0   : > { %v3604_v57 = vpack.c.bf16 %v3011_v56, %v3009_v54  ;;  %v3017_v56 = vld [vmem:[%s5024_s9 + $0x50] sm:$0xff] }
 0x9a1   : > { %v1641_v62 = vadd.f32 1e-06, %v1639_v60  ;;  %3589 = vmatpush3.bf16.msra.mxu1 %v3588_v58  ;;  %v1679_v60 = vrot.slane %v1674_v59, %v4379_v20 }
 0x9a2   : > { %3362 = vmatprep.subr.mxu1 %v3823_v5 }
 0x9a3   : > { %3735 = vrsqrt.f32 %v1641_v62  ;;  %v1683_v62 = vrot.slane %v1674_v59, %v4388_v26 }
 0x9ad   : > { %v3736_v0 = vpop.eup %3735 }
 0x9ae   : > { %v1643_v2 = vmul.f32 %v3736_v0, %v1640_v63 }
 0x9b0   : > { %v1650_v4 = vmul.f32 %v2989_v1, %v1643_v2 }
 0x9b2   : > { %v1657_v6 = vadd.f32 %v2990_v3, %v1650_v4 }
 0x9b4   : > { %2991 = vmatmul.mubr.msk.f32.vlgmr.msra.gmra.mrb[6].mxu0 %vm998_vm2, %v1657_v6 }
 0x9b5   : > { %2018 = vmatprep.mubr.f32.mxu0 %v3823_v5 }
 0xa87   : > { %v1755_v63 = vpop.f32.mrb[6].mxu0 }
 0xa88   : > { %v1756_v0 = vadd.f32 %v1755_v63, %v1679_v60  ;;  %v1757_v1 = vpop.f32.mrb[7].mxu0 }
 0xa89   : > { %v1758_v2 = vadd.f32 %v1757_v1, %v1683_v62 }
 0xa8a   : > { %v1760_v3 = vmul.f32 %v1756_v0, %v1756_v0 }
 0xa8b   : > { %v1761_v4 = vmul.f32 %v1758_v2, %v1758_v2 }
 0xa8c   : > { %v1762_v6 = vmul.f32 %v1760_v3, %v1756_v0 }
 0xa8d   : > { %v1763_v7 = vmul.f32 %v1761_v4, %v1758_v2  ;;  %v2995_v4 = vld [vmem:[%s5069_s29 + $0x1] ss:$0 sm:$0xff] }
 0xa8e   : > { %v1764_v8 = vmul.f32 0.044715, %v1762_v6 }
 0xa8f   : > { %v1765_v9 = vmul.f32 0.044715, %v1763_v7  ;;  %v2996_v7 = vld [vmem:[%s5021_s6 + $0x1] ss:$0 sm:$0xff] }
 0xa90   : > { %v1766_v10 = vadd.f32 %v1764_v8, %v1756_v0 }
 0xa91   : > { %v1767_v11 = vadd.f32 %v1765_v9, %v1758_v2 }
 0xa92   : > { %v1768_v12 = vmul.f32 0.7978846, %v1766_v10  ;;  %v3013_v10 = vld [vmem:[%s5023_s8 + $0x2] sm:$0x3] }
 0xa93   : > { %v1769_v13 = vmul.f32 0.7978846, %v1767_v11  ;;  %v1944_v11 = vrot.slane %v3013_v10, %v4379_v20 }
 0xa94   : > { %3737 = vtanh.f32 %v1768_v12  ;;  %v1948_v12 = vrot.slane %v3013_v10, %v4388_v26 }
 0xa95   : > { %3739 = vtanh.f32 %v1769_v13 }
 0xa9e   : > { %v3738_v14 = vpop.eup %3737 }
 0xa9f   : > { %v3740_v15 = vpop.eup %3739  ;;  %v1772_v16 = vadd.f32 1.0, %v3738_v14 }
 0xaa0   : > { %v1773_v17 = vadd.f32 1.0, %v3740_v15 }
 0xaa1   : > { %v1774_v18 = vmul.f32 0.5, %v1772_v16 }
 0xaa2   : > { %v1775_v19 = vmul.f32 0.5, %v1773_v17 }
 0xaa3   : > { %v1776_v22 = vmul.f32 %v1774_v18, %v1756_v0 }
 0xaa4   : > { %v1777_v21 = vmul.f32 %v1775_v19, %v1758_v2 }
 0xaa6   : > { %1881 = vmatprep.mubr.f32.mxu1 %v1777_v21 }
 0xaa7   : > { %1882 = vmatmul.mubr.f32.vlgmr.msra.gmra.mrb[14].mxu1 %v1776_v22 }
 0xaa8   : > { %3364 = vmatprep.mubr.msk.f32.mxu1 %vm3824_vm3, %v3823_v5 }
 0xb7a   : > { %v3250_v23 = vpop.f32.mrb[14].mxu1 }
 0xb7b   : > { %v3251_v27 = vpop.f32.mrb[15].mxu1 }
 0xb7c   : > { %v3252_v28 = vadd.f32 %v3251_v27, %v3250_v23 }
 0xb7e   : > { %v1884_v29 = vadd.f32 %v3252_v28, %v2992_v24 }
 0xb80   : > { %v4626_v30 = vadd.f32 %v1884_v29, %v4454_v25  ;;  %v3590_v25 = vpack.c.bf16 %v3000_v36, %v2998_v35 }
 0xb82   : > { %v1892_v41 = vsel %vm998_vm2, %v4626_v30, 0.0  ;;  %v1896_v32 = vmul.f32 %v4626_v30, %v4626_v30  ;;  %3591 = vmatprep.subr.bf16.mxu0 %v3590_v25 }
 0xb83   : > { %1893 = vadd.xlane.f32.xlu0 %v1892_v41  ;;  %3593 = vmatpush1.bf16.msra.mxu0 %v3592_v39 }
 0xb84   : > { %v1897_v33 = vsel %vm998_vm2, %v1896_v32, 0.0  ;;  %3595 = vmatprep.subr.bf16.mxu0 %v3594_v43 }
 0xb87   : > { %1898 = vadd.xlane.f32.xlu0 %v1897_v33  ;;  %3597 = vmatpush1.bf16.msra.mxu0 %v3596_v45 }
 0xb88   : > { %3599 = vmatprep.subr.bf16.mxu0 %v3598_v48 }
 0xb8b   : > { %3601 = vmatpush1.bf16.msra.mxu0 %v3600_v51  ;;  %v3016_v51 = vld [vmem:[%s5024_s9 + $0x48] sm:$0xff] }
 0xb8c   : > { %3603 = vmatprep.subr.bf16.mxu0 %v3602_v55  ;;  %v3613_v54 = vpack.c.bf16 %v3016_v51, %v3015_v50  ;;  %v3035_v50 = vld [vmem:[%s5026_s11 + $0x1] ss:$0 sm:$0xff] }
 0xb8f   : > { %3605 = vmatpush1.bf16.msra.mxu0 %v3604_v57  ;;  %v3018_v57 = vld [vmem:[%s5024_s9 + $0x58] sm:$0xff] }
 0xb90   : > { %3357 = vmatprep.subr.mxu0 %v3823_v5 }
 0xc10   : > { %v1894_v58 = vpop.xlane.xlu0 %1893 }
 0xc11   : > { %v1895_v59 = vmul.f32 0.015625, %v1894_v58  ;;  %v3616_v58 = vpack.c.bf16 %v3018_v57, %v3017_v56  ;;  %v3072_v56 = vld [vmem:[%s5030_s15 + $0x188] sm:$0xff] }
 0xc13   : > { %v1901_v62 = vmul.f32 %v1895_v59, %v1895_v59  ;;  %v1903_v2 = vsub.f32 %v4626_v30, %v1895_v59  ;;  %v3021_v59 = vld [vmem:[%s5024_s9 + $0x70] sm:$0xff] }
 0xc14   : > { %v1899_v60 = vpop.xlane.xlu0 %1898 }
 0xc15   : > { %v1900_v63 = vmul.f32 0.015625, %v1899_v60  ;;  %v3022_v60 = vld [vmem:[%s5024_s9 + $0x78] sm:$0xff] }
 0xc17   : > { %v1902_v0 = vsub.f32 %v1900_v63, %v1901_v62  ;;  %v3610_v62 = vpack.c.bf16 %v3022_v60, %v3021_v59  ;;  %v3056_v59 = vld [vmem:[%s5030_s15 + $0x108] sm:$0xff] }
 0xc19   : > { %v1904_v1 = vadd.f32 1e-06, %v1902_v0 }
 0xc1b   : > { %3741 = vrsqrt.f32 %v1904_v1 }
 0xc25   : > { %v3742_v3 = vpop.eup %3741 }
 0xc26   : > { %v1906_v6 = vmul.f32 %v3742_v3, %v1903_v2 }
 0xc28   : > { %v1913_v8 = vmul.f32 %v2995_v4, %v1906_v6 }
 0xc2a   : > { %v1920_v9 = vadd.f32 %v2996_v7, %v1913_v8 }
 0xc2c   : > { %3014 = vmatmul.mubr.msk.f32.vlgmr.msra.gmra.mrb[8].mxu0 %vm998_vm2, %v1920_v9  ;;  %v3032_v9 = vld [vmem:[%s5025_s10 + $0x1] ss:$0 sm:$0xff] }
 0xc2d   : > { %3359 = vmatprep.mubr.msk.f32.mxu0 %vm3824_vm3, %v3823_v5 }
 0xcff   : > { %v2020_v13 = vpop.f32.mrb[8].mxu0 }
 0xd00   : > { %v2021_v14 = vadd.f32 %v2020_v13, %v1944_v11  ;;  %v2022_v15 = vpop.f32.mrb[9].mxu0 }
 0xd01   : > { %v2023_v16 = vadd.f32 %v2022_v15, %v1948_v12  ;;  %v3038_v15 = vld [vmem:[%s5028_s13 + $0x88] sm:$0xff] }
 0xd02   : > { %2199 = vrot.lane.b32.xlu1 %v2021_v14, %s3825_s20  ;;  %2035 = vrot.lane.b32.xlu0 %v2021_v14, %s3826_s0  ;;  %s5071_s0 = sld [smem:[#allocation17_spill]]  ;;  %s3763_s20 = sshll.u32 %s3830_s3, 4  ;;  %s3764_s20 = int_to_ptr.vmem [resolvable:$false] %s3763_s20 }
 0xd03   : > { %3363 = vmatpush3.msra.mxu1 %v2023_v16  ;;  %p3766_p0 = scmp.lt.s32.totalorder %s4975_s2, %s3764_s20 }
 0xd04   : > { %3372 = vmatprep.subr.mxu1 %v3823_v5 }
 0xd06   : > { %2197 = vrot.lane.b32.xlu0 %v2021_v14, %s5070_s4 }
 0xd74   : > { %v2036_v17 = vpop.permute.xlu0 %2035  ;;  %v2200_v18 = vpop.permute.xlu1 %2199 }
 0xd75   : > { %3358 = vmatpush3.xpose.msk.msra.mxu0 %vm1142_vm4, %v2036_v17  ;;  %v3037_v17 = vld [vmem:[%s5028_s13 + $0x80] sm:$0xff] }
 0xd76   : > { %3367 = vmatprep.subr.mxu0 %v3823_v5 }
 0xd78   : > { %3360 = vmatmul.mubr.msk.f32.vlgmr.msra.gmra.mrb[10].mxu0 %vm1142_vm4, %v2021_v14  ;;  %v2198_v19 = vpop.permute.xlu0 %2197 }
 0xd79   : > { %3368 = vmatpush3.xpose.msk.msra.mxu0 %vm1142_vm4, %v2200_v18  ;;  %3369 = vmatprep.mubr.msk.f32.mxu0 %vm3824_vm3, %v3823_v5  ;;  %v3039_v18 = vld [vmem:[%s5028_s13 + $0x90] sm:$0xff] }
 0xd7a   : > { %3606 = vmatprep.subr.bf16.mxu0 %v3829_v61 }
 0xd7c   : > { %3370 = vmatmul.mubr.msk.f32.vlgmr.msra.gmra.mrb[12].mxu0 %vm1142_vm4, %v2198_v19  ;;  %v3620_v19 = vpack.c.bf16 %v3039_v18, %v3037_v17  ;;  %v3080_v17 = vld [vmem:[%s5030_s15 + $0x1c8] sm:$0xff]  ;;  %v3063_v18 = vld [vmem:[%s5030_s15 + $0x140] sm:$0xff] }
 0xd7d   : > { %3385 = vmatprep.mubr.msk.f32.mxu0 %vm3824_vm3, %v3823_v5 }
 0xe4b   : > { %v2107_v21 = vpop.f32.mrb[10].mxu0 }
 0xe4c   : > { %v2111_v22 = vmul.f32 0.17677669, %v2107_v21  ;;  %v3361_v23 = vpop.f32.mrb[11].mxu0  ;;  %v3042_v21 = vld [vmem:[%s5028_s13 + $0xa8] sm:$0xff] }
 0xe4e   : > { %v2112_v24 = vadd.f32 %v2111_v22, %v4398_v34  ;;  %v3044_v22 = vld [vmem:[%s5028_s13 + $0xb8] sm:$0xff] }
 0xe4f   : > { %v2271_v27 = vpop.f32.mrb[12].mxu0  ;;  %v3622_v23 = vpack.c.bf16 %v3044_v22, %v3042_v21  ;;  %v3064_v21 = vld [vmem:[%s5030_s15 + $0x148] sm:$0xff]  ;;  %v3081_v22 = vld [vmem:[%s5030_s15 + $0x1d0] sm:$0xff] }
 0xe50   : > { %v2275_v28 = vmul.f32 0.17677669, %v2271_v27  ;;  %v3371_v29 = vpop.f32.mrb[13].mxu0  ;;  %v2113_v41 = vsel %vm1219_vm6, %v2112_v24, -inf  ;;  %v3043_v27 = vld [vmem:[%s5028_s13 + $0xb0] sm:$0xff] }
 0xe51   : > { %2114 = vmax.xlane.f32.xlu0 %v2113_v41  ;;  %v3046_v29 = vld [vmem:[%s5028_s13 + $0xc8] sm:$0xff]  ;;  %v3048_v41 = vld [vmem:[%s5028_s13 + $0xd8] sm:$0xff] }
 0xe52   : > { %v2276_v32 = vadd.f32 %v2275_v28, %v4398_v34  ;;  %v3019_v34 = vld [vmem:[%s5024_s9 + $0x60] sm:$0xff] }
 0xe53   : > { %v3607_v45 = vpack.c.bf16 %v3020_v44, %v3019_v34 }
 0xe54   : > { %v2277_v33 = vsel %vm1219_vm6, %v2276_v32, -inf }
 0xe55   : > { %2278 = vmax.xlane.f32.xlu1 %v2277_v33  ;;  %3608 = vmatpush3.bf16.msra.mxu0 %v3607_v45  ;;  %v3045_v33 = vld [vmem:[%s5028_s13 + $0xc0] sm:$0xff] }
 0xe56   : > { %3609 = vmatprep.subr.bf16.mxu0 %v3829_v61 }
 0xe59   : > { %3611 = vmatpush3.bf16.msra.mxu0 %v3610_v62  ;;  %v3074_v62 = vld [vmem:[%s5030_s15 + $0x198] sm:$0xff] }
 0xede   : > { %v2115_v35 = vpop.xlane.xlu0 %2114 }
 0xedf   : > { %v2116_v36 = vsub.f32 %v2112_v24, %v2115_v35  ;;  %v3041_v24 = vld [vmem:[%s5028_s13 + $0xa0] sm:$0xff]  ;;  %v3047_v35 = vld [vmem:[%s5028_s13 + $0xd0] sm:$0xff] }
 0xee0   : > { %v3624_v28 = vpack.c.bf16 %v3043_v27, %v3041_v24  ;;  %v3652_v24 = vpack.c.bf16 %v3064_v21, %v3063_v18  ;;  %v2824_v18 = vld [vmem:[%s5034_s19 + $0x28] sm:$0xff]  ;;  %v2825_v21 = vld [vmem:[%s5034_s19 + $0x30] sm:$0xff] }
 0xee1   : > { %v2117_v25 = vmul.f32 1.442695, %v2116_v36  ;;  %v3628_v36 = vpack.c.bf16 %v3047_v35, %v3045_v33 }
 0xee2   : > { %v2279_v37 = vpop.xlane.xlu1 %2278 }
 0xee3   : > { %3743 = vpow2.f32 %v2117_v25  ;;  %v2280_v38 = vsub.f32 %v2276_v32, %v2279_v37  ;;  %v3626_v32 = vpack.c.bf16 %v3048_v41, %v3046_v29  ;;  %v3050_v25 = vld [vmem:[%s5028_s13 + $0xe8] sm:$0xff]  ;;  %v3052_v37 = vld [vmem:[%s5028_s13 + $0xf8] sm:$0xff]  ;;  %v3083_v41 = vld [vmem:[%s5030_s15 + $0x1e0] sm:$0xff] }
 0xee4   : > { %v3066_v29 = vld [vmem:[%s5030_s15 + $0x158] sm:$0xff] }
 0xee5   : > { %v2281_v39 = vmul.f32 1.442695, %v2280_v38  ;;  %v3049_v38 = vld [vmem:[%s5028_s13 + $0xe0] sm:$0xff] }
 0xee7   : > { %3745 = vpow2.f32 %v2281_v39  ;;  %v3630_v39 = vpack.c.bf16 %v3052_v37, %v3050_v25  ;;  %v3068_v25 = vld [vmem:[%s5030_s15 + $0x168] sm:$0xff]  ;;  %v3085_v37 = vld [vmem:[%s5030_s15 + $0x1f0] sm:$0xff] }
 0xeed   : > { %v3744_v40 = vpop.eup %3743 }
 0xeee   : > { %v2119_v42 = vsel %vm1219_vm6, %v3744_v40, 0.0 }
 0xeef   : > { %2120 = vadd.xlane.f32.xlu0 %v2119_v42 }
 0xef1   : > { %v3746_v43 = vpop.eup %3745 }
 0xef2   : > { %v2283_v31 = vsel %vm1219_vm6, %v3746_v43, 0.0 }
 0xef3   : > { %2284 = vadd.xlane.f32.xlu0 %v2283_v31 }
 0xf09   : > { %2289 = vrot.lane.b32.xlu0 %v2023_v16, %s5070_s4  ;;  %s3759_s4 = scalar_lea.vmem %s4975_s2, 16 }
 0xf0a   : > { %p3760_p11 = scmp.ne.s32.totalorder %s4975_s2, %s3759_s4 }
 0xf0c   : > { %p3761_p12 = pnand %p3760_p11, %p3979_p5 }
 0xf0e   : > { %p3762_p13 = pneg %p3761_p12 }
 0xf7c   : > { %v2121_v46 = vpop.xlane.xlu0 %2120 }
 0xf7d   : > { %3747 = vrcp.f32 %v2121_v46 }
 0xf80   : > { %v2285_v47 = vpop.xlane.xlu0 %2284 }
 0xf81   : > { %3749 = vrcp.f32 %v2285_v47 }
 0xf84   : > { %v2290_v52 = vpop.permute.xlu0 %2289 }
 0xf87   : > { %v3748_v48 = vpop.eup %3747 }
 0xf88   : > { %v2123_v49 = vmul.f32 %v3748_v48, %v3744_v40  ;;  %v3051_v40 = vld [vmem:[%s5028_s13 + $0xf0] sm:$0xff] }
 0xf89   : > { %v3632_v42 = vpack.c.bf16 %v3051_v40, %v3049_v38  ;;  %v3086_v38 = vld [vmem:[%s5030_s15 + $0x1f8] sm:$0xff] }
 0xf8a   : > { %3365 = vmatmul.mubr.msk.f32.vlgmr.msra.gmra.mrb[16].mxu1 %vm1219_vm6, %v2123_v49  ;;  %v3662_v40 = vpack.c.bf16 %v3086_v38, %v3085_v37 }
 0xf8b   : > { %v3750_v53 = vpop.eup %3749  ;;  %3373 = vmatpush3.msra.mxu1 %v2290_v52  ;;  %3374 = vmatprep.mubr.msk.f32.mxu1 %vm3824_vm3, %v3823_v5  ;;  %v3036_v52 = vld [vmem:[%s5027_s12 + $0x1] ss:$0 sm:$0xff] }
 0xf8c   : > { %v2287_v55 = vmul.f32 %v3750_v53, %v3746_v43  ;;  %3612 = vmatprep.subr.bf16.mxu1 %v3829_v61 }
 0xf8e   : > { %3375 = vmatmul.mubr.msk.f32.vlgmr.msra.gmra.mrb[18].mxu1 %vm1219_vm6, %v2287_v55  ;;  %v3071_v55 = vld [vmem:[%s5030_s15 + $0x180] sm:$0xff] }
 0xf8f   : > { %3614 = vmatpush3.bf16.msra.mxu1 %v3613_v54  ;;  %3396 = vmatprep.mubr.msk.f32.mxu1 %vm3824_vm3, %v3823_v5  ;;  %v3634_v57 = vpack.c.bf16 %v3072_v56, %v3071_v55 }
 0xf90   : > { %3615 = vmatprep.subr.bf16.mxu1 %v3829_v61 }
 0xf93   : > { %3617 = vmatpush3.bf16.msra.mxu1 %v3616_v58  ;;  %v3055_v58 = vld [vmem:[%s5030_s15 + $0x100] sm:$0xff] }
 0xf94   : > { %v3636_v60 = vpack.c.bf16 %v3056_v59, %v3055_v58  ;;  %3635 = vmatprep.subr.bf16.mxu1 %v3634_v57 }
0x105d   : > { %v2193_v63 = vpop.f32.mrb[16].mxu1 }
0x105e   : > { %v3366_v0 = vpop.f32.mrb[17].mxu1  ;;  %3397 = vmatmul.mubr.msk.f32.vlgmr.msra.gmra.mrb[20].mxu1 %vm1142_vm4, %v2193_v63 }
0x105f   : > { %3637 = vmatpush3.bf16.msra.mxu1 %v3636_v60  ;;  %v3057_v0 = vld [vmem:[%s5030_s15 + $0x110] sm:$0xff] }
0x1061   : > { %v2361_v1 = vpop.f32.mrb[18].mxu1 }
0x1062   : > { %v3376_v2 = vpop.f32.mrb[19].mxu1  ;;  %3386 = vmatmul.mubr.msk.f32.vlgmr.msra.gmra.mrb[14].mxu0 %vm1142_vm4, %v2361_v1  ;;  %v3058_v1 = vld [vmem:[%s5030_s15 + $0x118] sm:$0xff] }
0x1063   : > { %2651 = vmatprep.mubr.f32.mxu0 %v3823_v5  ;;  %v3640_v2 = vpack.c.bf16 %v3058_v1, %v3057_v0 }
0x1131   : > { %v2507_v3 = vpop.f32.mrb[20].mxu1 }
0x1132   : > { %v3398_v4 = vpop.f32.mrb[21].mxu1 }
0x1133   : > { %v3076_v4 = vld [vmem:[%s5030_s15 + $0x1a8] sm:$0xff] }
0x1135   : > { %v2434_v6 = vpop.f32.mrb[14].mxu0 }
0x1136   : > { %v2508_v7 = vadd.f32 %v2507_v3, %v2434_v6  ;;  %v3387_v8 = vpop.f32.mrb[15].mxu0  ;;  %v3075_v3 = vld [vmem:[%s5030_s15 + $0x1a0] sm:$0xff] }
0x1137   : > { %v3642_v6 = vpack.c.bf16 %v3076_v4, %v3075_v3  ;;  %v3060_v8 = vld [vmem:[%s5030_s15 + $0x128] sm:$0xff]  ;;  %v3088_v3 = vld [vmem:[%s5031_s16 + $0x1] ss:$0 sm:$0xff] }
0x1138   : > { %v2511_v10 = vadd.f32 %v2508_v7, %v4626_v30  ;;  %v3040_v30 = vld [vmem:[%s5028_s13 + $0x98] sm:$0xff]  ;;  %v3059_v7 = vld [vmem:[%s5030_s15 + $0x120] sm:$0xff] }
0x1139   : > { %v3618_v16 = vpack.c.bf16 %v3040_v30, %v3038_v15  ;;  %v3062_v15 = vld [vmem:[%s5030_s15 + $0x138] sm:$0xff] }
0x113a   : > { %v4758_v11 = vadd.f32 %v3032_v9, %v2511_v10  ;;  %v3644_v9 = vpack.c.bf16 %v3060_v8, %v3059_v7  ;;  %v3077_v10 = vld [vmem:[%s5030_s15 + $0x1b0] sm:$0xff] }
0x113b   : > { %3619 = vmatprep.subr.bf16.mxu0 %v3618_v16  ;;  %v3079_v16 = vld [vmem:[%s5030_s15 + $0x1c0] sm:$0xff] }
0x113c   : > { %v2525_v12 = vsel %vm998_vm2, %v4758_v11, 0.0  ;;  %v2529_v13 = vmul.f32 %v4758_v11, %v4758_v11  ;;  %3621 = vmatpush1.bf16.msra.mxu0 %v3620_v19  ;;  %v3650_v19 = vpack.c.bf16 %v3080_v17, %v3079_v16  ;;  %v2823_v17 = vld [vmem:[%s5034_s19 + $0x20] sm:$0xff] }
0x113d   : > { %2526 = vadd.xlane.f32.xlu1 %v2525_v12  ;;  %3623 = vmatprep.subr.bf16.mxu0 %v3622_v23  ;;  %v3078_v12 = vld [vmem:[%s5030_s15 + $0x1b8] sm:$0xff] }
0x113e   : > { %v2530_v14 = vsel %vm998_vm2, %v2529_v13, 0.0  ;;  %v3646_v13 = vpack.c.bf16 %v3078_v12, %v3077_v10  ;;  %v3082_v23 = vld [vmem:[%s5030_s15 + $0x1d8] sm:$0xff] }
0x113f   : > { %v3654_v27 = vpack.c.bf16 %v3082_v23, %v3081_v22  ;;  %v2826_v22 = vld [vmem:[%s5034_s19 + $0x38] sm:$0xff] }
0x1140   : > { %3625 = vmatpush1.bf16.msra.mxu0 %v3624_v28  ;;  %v3065_v28 = vld [vmem:[%s5030_s15 + $0x150] sm:$0xff]  ;;  %v3676_v23 = vpack.c.bf16 %v2826_v22, %v2825_v21 }
0x1141   : > { %2531 = vadd.xlane.f32.xlu1 %v2530_v14  ;;  %3627 = vmatprep.subr.bf16.mxu0 %v3626_v32  ;;  %v3061_v14 = vld [vmem:[%s5030_s15 + $0x130] sm:$0xff]  ;;  %v3084_v32 = vld [vmem:[%s5030_s15 + $0x1e8] sm:$0xff]  ;;  %v3656_v33 = vpack.c.bf16 %v3066_v29, %v3065_v28 }
0x1142   : > { %v3648_v30 = vpack.c.bf16 %v3062_v15, %v3061_v14  ;;  %v3658_v35 = vpack.c.bf16 %v3084_v32, %v3083_v41  ;;  %v2820_v14 = vld [vmem:[%s5034_s19 + $0x8] sm:$0xff] }
0x1144   : > { %3629 = vmatpush1.bf16.msra.mxu0 %v3628_v36  ;;  %v3067_v36 = vld [vmem:[%s5030_s15 + $0x160] sm:$0xff] }
0x1145   : > { %3631 = vmatprep.subr.bf16.mxu0 %v3630_v39  ;;  %v3660_v39 = vpack.c.bf16 %v3068_v25, %v3067_v36  ;;  %v3089_v25 = vld [vmem:[%s5032_s17] ss:$0 sm:$0xff] }
0x1148   : > { %3633 = vmatpush1.bf16.msra.mxu0 %v3632_v42  ;;  %v3069_v42 = vld [vmem:[%s5030_s15 + $0x170] sm:$0xff] }
0x1149   : > { %3666 = vmatprep.subr.bf16.mxu0 %v3829_v61 }
0x11ca   : > { %v2527_v43 = vpop.xlane.xlu1 %2526 }
0x11cb   : > { %v2528_v31 = vmul.f32 0.015625, %v2527_v43  ;;  %v3070_v43 = vld [vmem:[%s5030_s15 + $0x178] sm:$0xff] }
0x11cd   : > { %v2534_v44 = vmul.f32 %v2528_v31, %v2528_v31  ;;  %v2536_v48 = vsub.f32 %v4758_v11, %v2528_v31  ;;  %v3664_v31 = vpack.c.bf16 %v3070_v43, %v3069_v42 }
0x11ce   : > { %v2532_v34 = vpop.xlane.xlu1 %2531 }
0x11cf   : > { %v2533_v45 = vmul.f32 0.015625, %v2532_v34  ;;  %v3053_v34 = vld [vmem:[%s5029_s14 + $0x2] sm:$0x3] }
0x11d1   : > { %v2535_v46 = vsub.f32 %v2533_v45, %v2534_v44  ;;  %v2577_v44 = vrot.slane %v3053_v34, %v4379_v20  ;;  %v2581_v45 = vrot.slane %v3053_v34, %v4388_v26 }
0x11d3   : > { %v2537_v47 = vadd.f32 1e-06, %v2535_v46 }
0x11d5   : > { %3751 = vrsqrt.f32 %v2537_v47 }
0x11df   : > { %v3752_v49 = vpop.eup %3751 }
0x11e0   : > { %v2539_v51 = vmul.f32 %v3752_v49, %v2536_v48 }
0x11e2   : > { %v2546_v53 = vmul.f32 %v3035_v50, %v2539_v51 }
0x11e4   : > { %v2553_v54 = vadd.f32 %v3036_v52, %v2546_v53 }
0x11e6   : > { %3054 = vmatmul.mubr.msk.f32.vlgmr.msra.gmra.mrb[16].mxu0 %vm998_vm2, %v2553_v54 }
0x11e7   : > { %3415 = vmatprep.mubr.msk.f32.mxu0 %vm3824_vm3, %v3823_v5  ;;  %v3073_v5 = vld [vmem:[%s5030_s15 + $0x190] sm:$0xff] }
0x11e8   : > { %v3638_v63 = vpack.c.bf16 %v3074_v62, %v3073_v5 }
0x11ea   : > { %3639 = vmatprep.subr.bf16.mxu1 %v3638_v63 }
0x11eb   : > { %3641 = vmatpush3.bf16.msra.mxu1 %v3640_v2 }
0x11ec   : > { %3643 = vmatprep.subr.bf16.mxu1 %v3642_v6 }
0x11ef   : > { %3645 = vmatpush3.bf16.msra.mxu1 %v3644_v9 }
0x11f0   : > { %3647 = vmatprep.subr.bf16.mxu1 %v3646_v13  ;;  %v2819_v13 = vld [vmem:[%s5034_s19] sm:$0xff] }
0x11f1   : > { %v3667_v15 = vpack.c.bf16 %v2820_v14, %v2819_v13 }
0x11f3   : > { %3649 = vmatpush3.bf16.msra.mxu1 %v3648_v30  ;;  %3668 = vmatpush3.bf16.msra.mxu0 %v3667_v15  ;;  %v2822_v30 = vld [vmem:[%s5034_s19 + $0x18] sm:$0xff] }
0x11f4   : > { %3651 = vmatprep.subr.bf16.mxu1 %v3650_v19  ;;  %3669 = vmatprep.subr.bf16.mxu0 %v3829_v61  ;;  %v3673_v19 = vpack.c.bf16 %v2824_v18, %v2823_v17 }
0x11f7   : > { %3653 = vmatpush3.bf16.msra.mxu1 %v3652_v24 }
0x11f8   : > { %3655 = vmatprep.subr.bf16.mxu1 %v3654_v27 }
0x11fb   : > { %3657 = vmatpush3.bf16.msra.mxu1 %v3656_v33 }
0x11fc   : > { %3659 = vmatprep.subr.bf16.mxu1 %v3658_v35 }
0x11ff   : > { %3661 = vmatpush3.bf16.msra.mxu1 %v3660_v39 }
0x1200   : > { %3663 = vmatprep.subr.bf16.mxu1 %v3662_v40  ;;  %v2827_v40 = vld [vmem:[%s5071_s0] sm:$0x1]  ;;  %s3765_s0 = scalar_lea.vmem %s3764_s20, 32 }
0x1201   : > { %p3767_p1 = scmp.lt.s32.totalorder %s3765_s0, %s3759_s4 }
0x1203   : > { %3665 = vmatpush3.bf16.msra.mxu1 %v3664_v31  ;;  %p3768_p2 = por %p3767_p1, %p3766_p0 }
0x1205   : > { %p3769_p3 = pnand %p3768_p2, %p3762_p13 }
0x12b9   : > { %v2653_v46 = vpop.f32.mrb[16].mxu0 }
0x12ba   : > { %v2654_v47 = vadd.f32 %v2653_v46, %v2577_v44  ;;  %v2655_v48 = vpop.f32.mrb[17].mxu0 }
0x12bb   : > { %v2656_v49 = vadd.f32 %v2655_v48, %v2581_v45 }
0x12bc   : > { %v2658_v50 = vmul.f32 %v2654_v47, %v2654_v47 }
0x12bd   : > { %v2659_v51 = vmul.f32 %v2656_v49, %v2656_v49 }
0x12be   : > { %v2660_v52 = vmul.f32 %v2658_v50, %v2654_v47 }
0x12bf   : > { %v2661_v53 = vmul.f32 %v2659_v51, %v2656_v49 }
0x12c0   : > { %v2662_v54 = vmul.f32 0.044715, %v2660_v52 }
0x12c1   : > { %v2663_v55 = vmul.f32 0.044715, %v2661_v53 }
0x12c2   : > { %v2664_v56 = vadd.f32 %v2662_v54, %v2654_v47 }
0x12c3   : > { %v2665_v57 = vadd.f32 %v2663_v55, %v2656_v49 }
0x12c4   : > { %v2666_v58 = vmul.f32 0.7978846, %v2664_v56 }
0x12c5   : > { %v2667_v59 = vmul.f32 0.7978846, %v2665_v57 }
0x12c6   : > { %3753 = vtanh.f32 %v2666_v58 }
0x12c7   : > { %3755 = vtanh.f32 %v2667_v59 }
0x12d0   : > { %v3754_v60 = vpop.eup %3753 }
0x12d1   : > { %v3756_v20 = vpop.eup %3755  ;;  %v2670_v5 = vadd.f32 1.0, %v3754_v60 }
0x12d2   : > { %v2671_v26 = vadd.f32 1.0, %v3756_v20 }
0x12d3   : > { %v2672_v62 = vmul.f32 0.5, %v2670_v5 }
0x12d4   : > { %v2673_v63 = vmul.f32 0.5, %v2671_v26 }
0x12d5   : > { %v2674_v1 = vmul.f32 %v2672_v62, %v2654_v47 }
0x12d6   : > { %v2675_v0 = vmul.f32 %v2673_v63, %v2656_v49 }
0x12d8   : > { %2781 = vmatprep.mubr.f32.mxu1 %v2675_v0 }
0x12d9   : > { %2782 = vmatmul.mubr.f32.vlgmr.msra.gmra.mrb[22].mxu1 %v2674_v1 }
0x13ac   : > { %v3303_v2 = vpop.f32.mrb[22].mxu1 }
0x13ad   : > { %v3304_v4 = vpop.f32.mrb[23].mxu1 }
0x13ae   : > { %v3305_v6 = vadd.f32 %v3304_v4, %v3303_v2 }
0x13b0   : > { %v2784_v7 = vadd.f32 %v3305_v6, %v3088_v3 }
0x13b2   : > { %v2787_v8 = vadd.f32 %v2784_v7, %v4758_v11  ;;  %v2821_v11 = vld [vmem:[%s5034_s19 + $0x10] sm:$0xff] }
0x13b3   : > { %v3670_v16 = vpack.c.bf16 %v2822_v30, %v2821_v11 }
0x13b4   : > { %v2790_v9 = vsel %vm998_vm2, %v2787_v8, 0.0  ;;  %v2794_v10 = vmul.f32 %v2787_v8, %v2787_v8 }
0x13b5   : > { %2791 = vadd.xlane.f32.xlu1 %v2790_v9  ;;  %3671 = vmatpush3.bf16.msra.mxu0 %v3670_v16 }
0x13b6   : > { %v2795_v12 = vsel %vm998_vm2, %v2794_v10, 0.0  ;;  %3672 = vmatprep.subr.bf16.mxu0 %v3829_v61 }
0x13b9   : > { %2796 = vadd.xlane.f32.xlu1 %v2795_v12  ;;  %3674 = vmatpush3.bf16.msra.mxu0 %v3673_v19 }
0x13ba   : > { %3675 = vmatprep.subr.bf16.mxu0 %v3829_v61  ;;  %v3090_v61 = vld [vmem:[%s5033_s18] ss:$0 sm:$0xff] }
0x13bd   : > { %3677 = vmatpush3.bf16.msra.mxu0 %v3676_v23 }
0x1442   : > { %v2792_v24 = vpop.xlane.xlu1 %2791 }
0x1443   : > { %v2793_v27 = vmul.f32 0.015625, %v2792_v24 }
0x1445   : > { %v2799_v29 = vmul.f32 %v2793_v27, %v2793_v27  ;;  %v2801_v35 = vsub.f32 %v2787_v8, %v2793_v27 }
0x1446   : > { %v2797_v28 = vpop.xlane.xlu1 %2796 }
0x1447   : > { %v2798_v41 = vmul.f32 0.015625, %v2797_v28 }
0x1449   : > { %v2800_v32 = vsub.f32 %v2798_v41, %v2799_v29 }
0x144b   : > { %v2802_v33 = vadd.f32 1e-06, %v2800_v32 }
0x144d   : > { %3757 = vrsqrt.f32 %v2802_v33 }
0x1457   : > { %v3758_v36 = vpop.eup %3757 }
0x1458   : > { %v2804_v37 = vmul.f32 %v3758_v36, %v2801_v35 }
0x145a   : > { %v2811_v38 = vmul.f32 %v3089_v25, %v2804_v37 }
0x145c   : > { %v2818_v39 = vadd.f32 %v3090_v61, %v2811_v38 }
0x145e   : > { %3416 = vmatmul.mubr.msk.f32.vlgmr.msra.gmra.mrb[18].mxu0 %vm998_vm2, %v2818_v39 }
0x1531   : > { %v2897_v42 = vpop.f32.mrb[18].mxu0 }
0x1532   : > { %v2898_v43 = vadd.f32 %v2897_v42, %v2827_v40  ;;  %v3417_v31 = vpop.f32.mrb[19].mxu0 }
0x1534   : > { %2901 = vst [vmem:[%s648_s1] sm:$0x1] %v2898_v43 }
0x1535   : > { %3772 = shalt.err (!%p3769_p3)
}
0x1536   : > { %s3773_s21 = scalar_lea.hbm %s4973_s27, 16  ;;  %s3777_s22 = scalar_lea.hbm %s5072_s23, 32 }
0x1537   : > { %p3774_p4 = scmp.ne.s32.totalorder %s4973_s27, %s3773_s21  ;;  %p3778_p9 = scmp.lt.u32.totalorder %s4973_s27, %s5072_s23 }
0x1538   : > { %p3779_p10 = scmp.lt.u32.totalorder %s3777_s22, %s3773_s21  ;;  %p3781_p12 = scmp.lt.u32.totalorder %s3773_s21, %s4973_s27 }
0x1539   : > { %p3775_p7 = pnand %p3774_p4, %p3979_p5 }
0x153a   : > { %p3780_p11 = por %p3779_p10, %p3778_p9 }
0x153b   : > { %p3776_p8 = pneg %p3775_p7 }
0x153c   : > { %p3782_p13 = por %p3781_p12, %p3780_p11 }
0x153e   : > { %p3783_p0 = pnand %p3782_p13, %p3776_p8 }
0x1540   : > { %3786 = shalt.err (!%p3783_p0)
}
0x1541   : > { %3679 = dma.vmem_to_hbm [thread:$0]  (%p3979_p5), %s4975_s2, 16, %s4973_s27, %s2903_s26  }
0x1542 PF: > { %s5073_s4 = sld [smem:[#allocation7_spill]]  ;;  %s5074_s20 = sld [smem:[#allocation5_spill]] }
0x1548   : > { %p3685_p1 = scmp.ge.s32.totalorder %s5073_s4, 2  ;;  %s2927_s28 = sand.u32 1, %s5074_s20  }
0x1549   : > { %s2928_s1 = scalar_lea.sflag [#allocation3], %s2927_s28 }
0x154a   : > { %p3682_p2 = pnand %p3685_p1, %p3983_p6 }
0x154c   : > { %3804 = dma.done.wait (!%p3682_p2), %s2928_s1, 16  }
0x154d   : > { %3806 = vsyncadd (!%p3682_p2), %s2928_s1, 4294967280  ;;  %s5076_s27 = sld [smem:[#allocation8_spill]]  ;;  %s5077_s21 = sld [smem:[#allocation6_spill]] }
0x154e   : > { %s5078_s26 = sld [smem:[#allocation9_spill]]  ;;  %s5079_s2 = smov %s3813_s25 }
0x1553   : > { %p31_p3 = scmp.ge.s32.totalorder %s5076_s27, 4   ;;  %s5080_s25 = smov %s5077_s21 }
0x1555   :  { %33 = sbr.rel (!%p31_p3) target bundleno = 12 (0xc), region = 151 }
0x155c   :  { %2932 = vsyncpa [#allocation3], 1 }
0x155d   :  { %2934 = vsyncpa [#allocation3 + $0x1], 1 }

</bundles_post_ra>
